<compile_context>
chip_gen: v5e
topology: v5e:2x2
jax: 0.10.0
libtpu: 0.0.40
codegen_flags: <defaults>
</compile_context>

<pallas_src>
import functools

import jax
import jax.numpy as jnp
from jax.experimental import pallas as pl
from jax.experimental.pallas import tpu as pltpu


# ----------------------------------------------------------------------------
# Fused attention sub-layer kernel:  LN(residual + OutProj(MHA(q, k, v)))
# ----------------------------------------------------------------------------

def _attn_block_kernel(q_ref, k_ref, v_ref, res_ref, bias_ref,
                       wq_ref, wk_ref, wv_ref, bq_ref, bk_ref, bv_ref,
                       wo_ref, bo_ref, g_ref, bt_ref, o_ref, *, nhead, scale):
    Lq = q_ref.shape[1]
    E = q_ref.shape[2]
    hd = E // nhead

    qin = q_ref[0].astype(jnp.bfloat16)          # (Lq, E)
    kin = k_ref[0].astype(jnp.bfloat16)          # (Lk, E)
    vin = v_ref[0].astype(jnp.bfloat16)          # (Lk, E)

    # Fused QKV projections (bf16 operands, f32 accumulation).
    q = jnp.dot(qin, wq_ref[...], preferred_element_type=jnp.float32) + bq_ref[...]
    k = jnp.dot(kin, wk_ref[...], preferred_element_type=jnp.float32) + bk_ref[...]
    v = jnp.dot(vin, wv_ref[...], preferred_element_type=jnp.float32) + bv_ref[...]

    q = (q * scale).astype(jnp.bfloat16)
    k = k.astype(jnp.bfloat16)
    v = v.astype(jnp.bfloat16)
    bias = bias_ref[0]                           # (1, Lk) f32, broadcast over Lq
    wo = wo_ref[...]                             # (E, E) bf16

    # Per-head attention; out-projection folded into the head loop so the
    # accumulator stays lane-dense (Lq, E) and no concatenate is needed.
    acc = jnp.zeros((Lq, E), jnp.float32)
    for h in range(nhead):
        sl = slice(h * hd, (h + 1) * hd)
        s = jax.lax.dot_general(q[:, sl], k[:, sl], (((1,), (1,)), ((), ())),
                                preferred_element_type=jnp.float32) + bias
        m = jnp.max(s, axis=-1, keepdims=True)
        p = jnp.exp(s - m)
        p = p * pl.reciprocal(jnp.sum(p, axis=-1, keepdims=True), approx=True)
        oh = jnp.dot(p.astype(jnp.bfloat16), v[:, sl],
                     preferred_element_type=jnp.float32)          # (Lq, hd)
        acc = acc + jnp.dot(oh.astype(jnp.bfloat16), wo[sl, :],
                            preferred_element_type=jnp.float32)   # (Lq, E)

    # Residual + out-proj bias + LayerNorm epilogue (all in VMEM).
    y = res_ref[0] + acc + bo_ref[...]
    mu = jnp.mean(y, axis=-1, keepdims=True)
    var = jnp.mean((y - mu) ** 2, axis=-1, keepdims=True)
    o_ref[0] = (y - mu) * jax.lax.rsqrt(var + 1e-5) * g_ref[...] + bt_ref[...]


def attn_block(q_in, k_in, v_in, residual, bias, p, gamma, beta, nhead):
    """Fused attention sub-layer.

    q_in:(B,Lq,E) k_in,v_in:(B,Lk,E) residual:(B,Lq,E) bias:(B,1,Lk) -> (B,Lq,E)
    """
    B, Lq, E = q_in.shape
    Lk = k_in.shape[1]
    hd = E // nhead
    scale = hd ** -0.5

    wq = p["in_w"][:, :E].astype(jnp.bfloat16)
    wk = p["in_w"][:, E:2 * E].astype(jnp.bfloat16)
    wv = p["in_w"][:, 2 * E:].astype(jnp.bfloat16)
    bq = p["in_b"][:E].reshape(1, E)
    bk = p["in_b"][E:2 * E].reshape(1, E)
    bv = p["in_b"][2 * E:].reshape(1, E)
    wo = p["out_w"].astype(jnp.bfloat16)
    bo = p["out_b"].reshape(1, E)

    kern = functools.partial(_attn_block_kernel, nhead=nhead, scale=scale)
    return pl.pallas_call(
        kern,
        out_shape=jax.ShapeDtypeStruct((B, Lq, E), jnp.float32),
        grid=(B,),
        in_specs=[
            pl.BlockSpec((1, Lq, E), lambda i: (i, 0, 0)),   # q input
            pl.BlockSpec((1, Lk, E), lambda i: (i, 0, 0)),   # k input
            pl.BlockSpec((1, Lk, E), lambda i: (i, 0, 0)),   # v input
            pl.BlockSpec((1, Lq, E), lambda i: (i, 0, 0)),   # residual
            pl.BlockSpec((1, 1, Lk), lambda i: (i, 0, 0)),   # padding-mask bias
            pl.BlockSpec((E, E), lambda i: (0, 0)),          # Wq
            pl.BlockSpec((E, E), lambda i: (0, 0)),          # Wk
            pl.BlockSpec((E, E), lambda i: (0, 0)),          # Wv
            pl.BlockSpec((1, E), lambda i: (0, 0)),          # bq
            pl.BlockSpec((1, E), lambda i: (0, 0)),          # bk
            pl.BlockSpec((1, E), lambda i: (0, 0)),          # bv
            pl.BlockSpec((E, E), lambda i: (0, 0)),          # Wo
            pl.BlockSpec((1, E), lambda i: (0, 0)),          # bo
            pl.BlockSpec((1, E), lambda i: (0, 0)),          # gamma
            pl.BlockSpec((1, E), lambda i: (0, 0)),          # beta
        ],
        out_specs=pl.BlockSpec((1, Lq, E), lambda i: (i, 0, 0)),
        compiler_params=pltpu.CompilerParams(dimension_semantics=("parallel",)),
    )(q_in, k_in, v_in, residual, bias, wq, wk, wv, bq, bk, bv, wo, bo,
      gamma.reshape(1, E), beta.reshape(1, E))


# ----------------------------------------------------------------------------
# Fused FFN kernel:  LN(x + lin2(relu(lin1(x))))
# ----------------------------------------------------------------------------

def _ffn_kernel(x_ref, w1_ref, b1_ref, w2_ref, b2_ref, g_ref, bt_ref, o_ref):
    x = x_ref[...]                                            # (tm, E) f32
    h = jnp.dot(x.astype(jnp.bfloat16), w1_ref[...],
                preferred_element_type=jnp.float32) + b1_ref[...]
    h = jnp.maximum(h, 0.0)                                   # hidden stays in VMEM
    y = jnp.dot(h.astype(jnp.bfloat16), w2_ref[...],
                preferred_element_type=jnp.float32) + b2_ref[...]
    y = x + y
    mu = jnp.mean(y, axis=-1, keepdims=True)
    var = jnp.mean((y - mu) ** 2, axis=-1, keepdims=True)
    o_ref[...] = (y - mu) * jax.lax.rsqrt(var + 1e-5) * g_ref[...] + bt_ref[...]


def _pick_tile(m, cap=256):
    """Largest row tile <= cap that divides m (keeps per-block VMEM bounded
    on v5e/v7x while giving a real pipelined grid for large m)."""
    if m <= cap:
        return m
    t = cap
    while t >= 8:
        if m % t == 0:
            return t
        t //= 2
    return m


def ffn_block(x, w1, b1, w2, b2, gamma, beta):
    """x:(M,E) -> LN(x + relu(x@w1+b1)@w2+b2), one fused kernel tiled over M."""
    M, E = x.shape
    F = w1.shape[1]
    tm = _pick_tile(M)
    return pl.pallas_call(
        _ffn_kernel,
        out_shape=jax.ShapeDtypeStruct((M, E), jnp.float32),
        grid=(M // tm,),
        in_specs=[
            pl.BlockSpec((tm, E), lambda i: (i, 0)),
            pl.BlockSpec((E, F), lambda i: (0, 0)),
            pl.BlockSpec((1, F), lambda i: (0, 0)),
            pl.BlockSpec((F, E), lambda i: (0, 0)),
            pl.BlockSpec((1, E), lambda i: (0, 0)),
            pl.BlockSpec((1, E), lambda i: (0, 0)),
            pl.BlockSpec((1, E), lambda i: (0, 0)),
        ],
        out_specs=pl.BlockSpec((tm, E), lambda i: (i, 0)),
        compiler_params=pltpu.CompilerParams(dimension_semantics=("parallel",)),
    )(x, w1.astype(jnp.bfloat16), b1.reshape(1, F), w2.astype(jnp.bfloat16),
      b2.reshape(1, E), gamma.reshape(1, E), beta.reshape(1, E))


# ----------------------------------------------------------------------------
# TransformerDecoderLayer.forward (normalize_before=False -> forward_post)
# ----------------------------------------------------------------------------

def decoder_layer_forward(params, tgt, memory, *, nhead,
                          memory_key_padding_mask=None, pos=None, query_pos=None):
    """tgt:(Lq,B,E) memory:(Lk,B,E) (seq-first, like torch) -> (Lq,B,E)."""
    # TODO(synk): attn_mask (tgt_mask / memory_mask) and training-mode dropout
    # are not implemented; key_padding_mask and eval-mode forward are.
    Lq, B, E = tgt.shape
    Lk = memory.shape[0]

    tgt_b = jnp.transpose(tgt, (1, 0, 2))          # (B, Lq, E)
    mem_b = jnp.transpose(memory, (1, 0, 2))       # (B, Lk, E)
    qp_b = None if query_pos is None else jnp.transpose(query_pos, (1, 0, 2))
    pos_b = None if pos is None else jnp.transpose(pos, (1, 0, 2))

    def add_pos(x, p_):
        return x if p_ is None else x + p_

    # --- self-attention + residual + LayerNorm (single fused kernel) ---
    sa_q = add_pos(tgt_b, qp_b)
    zero_bias = jnp.zeros((B, 1, Lq), jnp.float32)
    x = attn_block(sa_q, sa_q, tgt_b, tgt_b, zero_bias, params["sa"],
                   params["ln1_g"], params["ln1_b"], nhead)

    # --- cross-attention + residual + LayerNorm (single fused kernel) ---
    if memory_key_padding_mask is None:
        mem_bias = jnp.zeros((B, 1, Lk), jnp.float32)
    else:
        mem_bias = jnp.where(memory_key_padding_mask, -1e30, 0.0)
        mem_bias = mem_bias.astype(jnp.float32).reshape(B, 1, Lk)
    x = attn_block(add_pos(x, qp_b), add_pos(mem_b, pos_b), mem_b, x, mem_bias,
                   params["ca"], params["ln2_g"], params["ln2_b"], nhead)

    # --- FFN + residual + LayerNorm (single fused kernel, tiled rows) ---
    y = ffn_block(x.reshape(B * Lq, E), params["lin1_w"], params["lin1_b"],
                  params["lin2_w"], params["lin2_b"],
                  params["ln3_g"], params["ln3_b"])
    return jnp.transpose(y.reshape(B, Lq, E), (1, 0, 2))


# ----------------------------------------------------------------------------
# Pure-JAX (f32) reference for correctness checking
# ----------------------------------------------------------------------------

def _mha_ref(qin, kin, vin, p, nhead, bias):
    B, Lq, E = qin.shape
    Lk = kin.shape[1]
    hd = E // nhead
    q = qin @ p["in_w"][:, :E] + p["in_b"][:E]
    k = kin @ p["in_w"][:, E:2 * E] + p["in_b"][E:2 * E]
    v = vin @ p["in_w"][:, 2 * E:] + p["in_b"][2 * E:]
    q = q * (hd ** -0.5)
    q = q.reshape(B, Lq, nhead, hd).transpose(0, 2, 1, 3)
    k = k.reshape(B, Lk, nhead, hd).transpose(0, 2, 1, 3)
    v = v.reshape(B, Lk, nhead, hd).transpose(0, 2, 1, 3)
    s = jnp.einsum("bhqd,bhkd->bhqk", q, k) + bias[:, None, :, :]
    s = s - s.max(-1, keepdims=True)
    w = jnp.exp(s)
    w = w / w.sum(-1, keepdims=True)
    o = jnp.einsum("bhqk,bhkd->bhqd", w, v)
    o = o.transpose(0, 2, 1, 3).reshape(B, Lq, E)
    return o @ p["out_w"] + p["out_b"]


def _ln_ref(x, g, b):
    mu = x.mean(-1, keepdims=True)
    var = ((x - mu) ** 2).mean(-1, keepdims=True)
    return (x - mu) * jax.lax.rsqrt(var + 1e-5) * g + b


def decoder_layer_ref(p, tgt, memory, nhead, memory_key_padding_mask, pos, query_pos):
    tgt_b = tgt.transpose(1, 0, 2)
    mem_b = memory.transpose(1, 0, 2)
    qp = query_pos.transpose(1, 0, 2)
    pp = pos.transpose(1, 0, 2)
    B, Lq, _ = tgt_b.shape
    Lk = mem_b.shape[1]
    zb = jnp.zeros((B, 1, Lq), jnp.float32)
    q = tgt_b + qp
    x = _ln_ref(tgt_b + _mha_ref(q, q, tgt_b, p["sa"], nhead, zb),
                p["ln1_g"], p["ln1_b"])
    mb = jnp.where(memory_key_padding_mask, -1e30, 0.0)[:, None, :].astype(jnp.float32)
    x = _ln_ref(x + _mha_ref(x + qp, mem_b + pp, mem_b, p["ca"], nhead, mb),
                p["ln2_g"], p["ln2_b"])
    h = jnp.maximum(x @ p["lin1_w"] + p["lin1_b"], 0.0)
    x = _ln_ref(x + (h @ p["lin2_w"] + p["lin2_b"]), p["ln3_g"], p["ln3_b"])
    return x.transpose(1, 0, 2)


# ----------------------------------------------------------------------------
# Deterministic parameter init (xavier weights, zero biases, ones/zeros LN)
# ----------------------------------------------------------------------------

def _xavier(key, fan_in, fan_out):
    bound = (6.0 / (fan_in + fan_out)) ** 0.5
    return jax.random.uniform(key, (fan_in, fan_out), jnp.float32, -bound, bound)


def _mha_params(key, E):
    k1, k2 = jax.random.split(key)
    return {
        "in_w": _xavier(k1, E, 3 * E),
        "in_b": jnp.zeros((3 * E,), jnp.float32),
        "out_w": _xavier(k2, E, E),
        "out_b": jnp.zeros((E,), jnp.float32),
    }


def init_decoder_layer_params(key, E, F):
    ks = jax.random.split(key, 4)
    return {
        "sa": _mha_params(ks[0], E),
        "ca": _mha_params(ks[1], E),
        "lin1_w": _xavier(ks[2], E, F), "lin1_b": jnp.zeros((F,), jnp.float32),
        "lin2_w": _xavier(ks[3], F, E), "lin2_b": jnp.zeros((E,), jnp.float32),
        "ln1_g": jnp.ones((E,), jnp.float32), "ln1_b": jnp.zeros((E,), jnp.float32),
        "ln2_g": jnp.ones((E,), jnp.float32), "ln2_b": jnp.zeros((E,), jnp.float32),
        "ln3_g": jnp.ones((E,), jnp.float32), "ln3_b": jnp.zeros((E,), jnp.float32),
    }


if __name__ == "__main__":
    d_model, nhead, dim_feedforward = 32, 4, 64
    B, Lq, Lk = 2, 8, 16

    root = jax.random.PRNGKey(0)
    kp, kt, km, kpe, kqe = jax.random.split(root, 5)

    params = init_decoder_layer_params(kp, d_model, dim_feedforward)
    tgt = jax.random.normal(kt, (Lq, B, d_model), jnp.float32)
    memory = jax.random.normal(km, (Lk, B, d_model), jnp.float32)
    pos = jax.random.normal(kpe, (Lk, B, d_model), jnp.float32)
    query_pos = jax.random.normal(kqe, (Lq, B, d_model), jnp.float32)
    # Key-padding mask: last 4 memory positions of batch 1 are padded.
    mem_mask = jnp.zeros((B, Lk), jnp.bool_).at[1, Lk - 4:].set(True)

    fwd = jax.jit(functools.partial(decoder_layer_forward, nhead=nhead))
    out = fwd(params, tgt, memory, memory_key_padding_mask=mem_mask,
              pos=pos, query_pos=query_pos)
    out = jax.block_until_ready(out)

    assert out.shape == (Lq, B, d_model), out.shape
    assert bool(jnp.all(jnp.isfinite(out)))

    ref = decoder_layer_ref(params, tgt, memory, nhead, mem_mask, pos, query_pos)
    max_err = float(jnp.max(jnp.abs(out - ref)))
    assert max_err < 0.2, f"max abs error vs f32 reference: {max_err}"
    print("KERNEL_OK")
</pallas_src>

<mosaic_0001>
module attributes {stable_mosaic.version = 11 : i64} {
  func.func @_attn_block_kernel(%arg0: i32, %arg1: memref<1x8x32xf32, #tpu.memory_space<vmem>>, %arg2: memref<1x8x32xf32, #tpu.memory_space<vmem>>, %arg3: memref<1x8x32xf32, #tpu.memory_space<vmem>>, %arg4: memref<1x8x32xf32, #tpu.memory_space<vmem>>, %arg5: memref<1x1x8xf32, #tpu.memory_space<vmem>>, %arg6: memref<32x32xbf16, #tpu.memory_space<vmem>>, %arg7: memref<32x32xbf16, #tpu.memory_space<vmem>>, %arg8: memref<32x32xbf16, #tpu.memory_space<vmem>>, %arg9: memref<1x32xf32, #tpu.memory_space<vmem>>, %arg10: memref<1x32xf32, #tpu.memory_space<vmem>>, %arg11: memref<1x32xf32, #tpu.memory_space<vmem>>, %arg12: memref<32x32xbf16, #tpu.memory_space<vmem>>, %arg13: memref<1x32xf32, #tpu.memory_space<vmem>>, %arg14: memref<1x32xf32, #tpu.memory_space<vmem>>, %arg15: memref<1x32xf32, #tpu.memory_space<vmem>>, %arg16: memref<1x8x32xf32, #tpu.memory_space<vmem>>) attributes {dimension_semantics = [#tpu.dimension_semantics<parallel>], iteration_bounds = array<i64: 2>, scalar_prefetch = 0 : i64, scratch_operands = 0 : i64, tpu.core_type = #tpu.core_type<tc>, window_params = [{transform_indices = @transform_0, window_bounds = array<i64: 1, 8, 32>}, {transform_indices = @transform_1, window_bounds = array<i64: 1, 8, 32>}, {transform_indices = @transform_2, window_bounds = array<i64: 1, 8, 32>}, {transform_indices = @transform_3, window_bounds = array<i64: 1, 8, 32>}, {transform_indices = @transform_4, window_bounds = array<i64: 1, 1, 8>}, {pipeline_mode = #tpu.pipeline_mode<synchronous>, transform_indices = @transform_5, window_bounds = array<i64: 32, 32>}, {pipeline_mode = #tpu.pipeline_mode<synchronous>, transform_indices = @transform_6, window_bounds = array<i64: 32, 32>}, {pipeline_mode = #tpu.pipeline_mode<synchronous>, transform_indices = @transform_7, window_bounds = array<i64: 32, 32>}, {pipeline_mode = #tpu.pipeline_mode<synchronous>, transform_indices = @transform_8, window_bounds = array<i64: 1, 32>}, {pipeline_mode = #tpu.pipeline_mode<synchronous>, transform_indices = @transform_9, window_bounds = array<i64: 1, 32>}, {pipeline_mode = #tpu.pipeline_mode<synchronous>, transform_indices = @transform_10, window_bounds = array<i64: 1, 32>}, {pipeline_mode = #tpu.pipeline_mode<synchronous>, transform_indices = @transform_11, window_bounds = array<i64: 32, 32>}, {pipeline_mode = #tpu.pipeline_mode<synchronous>, transform_indices = @transform_12, window_bounds = array<i64: 1, 32>}, {pipeline_mode = #tpu.pipeline_mode<synchronous>, transform_indices = @transform_13, window_bounds = array<i64: 1, 32>}, {pipeline_mode = #tpu.pipeline_mode<synchronous>, transform_indices = @transform_14, window_bounds = array<i64: 1, 32>}, {transform_indices = @transform_15, window_bounds = array<i64: 1, 8, 32>}]} {
    %c0 = arith.constant 0 : index
    %c0_0 = arith.constant 0 : index
    %c0_1 = arith.constant 0 : index
    %0 = vector.load %arg1[%c0, %c0_0, %c0_1] : memref<1x8x32xf32, #tpu.memory_space<vmem>>, vector<1x8x32xf32>
    %1 = vector.shape_cast %0 : vector<1x8x32xf32> to vector<8x32xf32>
    %2 = arith.truncf %1 : vector<8x32xf32> to vector<8x32xbf16>
    %c0_2 = arith.constant 0 : index
    %c0_3 = arith.constant 0 : index
    %c0_4 = arith.constant 0 : index
    %3 = vector.load %arg2[%c0_2, %c0_3, %c0_4] : memref<1x8x32xf32, #tpu.memory_space<vmem>>, vector<1x8x32xf32>
    %4 = vector.shape_cast %3 : vector<1x8x32xf32> to vector<8x32xf32>
    %5 = arith.truncf %4 : vector<8x32xf32> to vector<8x32xbf16>
    %c0_5 = arith.constant 0 : index
    %c0_6 = arith.constant 0 : index
    %c0_7 = arith.constant 0 : index
    %6 = vector.load %arg3[%c0_5, %c0_6, %c0_7] : memref<1x8x32xf32, #tpu.memory_space<vmem>>, vector<1x8x32xf32>
    %7 = vector.shape_cast %6 : vector<1x8x32xf32> to vector<8x32xf32>
    %8 = arith.truncf %7 : vector<8x32xf32> to vector<8x32xbf16>
    %c0_8 = arith.constant 0 : index
    %c0_9 = arith.constant 0 : index
    %9 = vector.load %arg6[%c0_8, %c0_9] : memref<32x32xbf16, #tpu.memory_space<vmem>>, vector<32x32xbf16>
    %cst = arith.constant dense<0.000000e+00> : vector<8x32xf32>
    %10 = tpu.matmul %2, %9, %cst {dimension_numbers = #tpu.dot_dimension_numbers<[1], [0], [0], [1], [0, 0, 1, 1], [], []>} : vector<8x32xbf16>, vector<32x32xbf16>, vector<8x32xf32> -> vector<8x32xf32>
    %c0_10 = arith.constant 0 : index
    %c0_11 = arith.constant 0 : index
    %11 = vector.load %arg9[%c0_10, %c0_11] : memref<1x32xf32, #tpu.memory_space<vmem>>, vector<1x32xf32>
    %12 = vector.broadcast %11 : vector<1x32xf32> to vector<8x32xf32>
    %13 = arith.addf %10, %12 : vector<8x32xf32>
    %c0_12 = arith.constant 0 : index
    %c0_13 = arith.constant 0 : index
    %14 = vector.load %arg7[%c0_12, %c0_13] : memref<32x32xbf16, #tpu.memory_space<vmem>>, vector<32x32xbf16>
    %cst_14 = arith.constant dense<0.000000e+00> : vector<8x32xf32>
    %15 = tpu.matmul %5, %14, %cst_14 {dimension_numbers = #tpu.dot_dimension_numbers<[1], [0], [0], [1], [0, 0, 1, 1], [], []>} : vector<8x32xbf16>, vector<32x32xbf16>, vector<8x32xf32> -> vector<8x32xf32>
    %c0_15 = arith.constant 0 : index
    %c0_16 = arith.constant 0 : index
    %16 = vector.load %arg10[%c0_15, %c0_16] : memref<1x32xf32, #tpu.memory_space<vmem>>, vector<1x32xf32>
    %17 = vector.broadcast %16 : vector<1x32xf32> to vector<8x32xf32>
    %18 = arith.addf %15, %17 : vector<8x32xf32>
    %c0_17 = arith.constant 0 : index
    %c0_18 = arith.constant 0 : index
    %19 = vector.load %arg8[%c0_17, %c0_18] : memref<32x32xbf16, #tpu.memory_space<vmem>>, vector<32x32xbf16>
    %cst_19 = arith.constant dense<0.000000e+00> : vector<8x32xf32>
    %20 = tpu.matmul %8, %19, %cst_19 {dimension_numbers = #tpu.dot_dimension_numbers<[1], [0], [0], [1], [0, 0, 1, 1], [], []>} : vector<8x32xbf16>, vector<32x32xbf16>, vector<8x32xf32> -> vector<8x32xf32>
    %c0_20 = arith.constant 0 : index
    %c0_21 = arith.constant 0 : index
    %21 = vector.load %arg11[%c0_20, %c0_21] : memref<1x32xf32, #tpu.memory_space<vmem>>, vector<1x32xf32>
    %22 = vector.broadcast %21 : vector<1x32xf32> to vector<8x32xf32>
    %23 = arith.addf %20, %22 : vector<8x32xf32>
    %cst_22 = arith.constant 0.353553385 : f32
    %24 = vector.broadcast %cst_22 : f32 to vector<8x32xf32>
    %25 = arith.mulf %13, %24 : vector<8x32xf32>
    %26 = arith.truncf %25 : vector<8x32xf32> to vector<8x32xbf16>
    %27 = arith.truncf %18 : vector<8x32xf32> to vector<8x32xbf16>
    %28 = arith.truncf %23 : vector<8x32xf32> to vector<8x32xbf16>
    %c0_23 = arith.constant 0 : index
    %c0_24 = arith.constant 0 : index
    %c0_25 = arith.constant 0 : index
    %29 = vector.load %arg5[%c0_23, %c0_24, %c0_25] : memref<1x1x8xf32, #tpu.memory_space<vmem>>, vector<1x1x8xf32>
    %30 = vector.shape_cast %29 : vector<1x1x8xf32> to vector<1x8xf32>
    %c0_26 = arith.constant 0 : index
    %c0_27 = arith.constant 0 : index
    %31 = vector.load %arg12[%c0_26, %c0_27] : memref<32x32xbf16, #tpu.memory_space<vmem>>, vector<32x32xbf16>
    %cst_28 = arith.constant 0.000000e+00 : f32
    %32 = vector.broadcast %cst_28 : f32 to vector<8x32xf32>
    %33 = vector.extract_strided_slice %26 {offsets = [0, 0], sizes = [8, 8], strides = [1, 1]} : vector<8x32xbf16> to vector<8x8xbf16>
    %34 = vector.extract_strided_slice %27 {offsets = [0, 0], sizes = [8, 8], strides = [1, 1]} : vector<8x32xbf16> to vector<8x8xbf16>
    %cst_29 = arith.constant dense<0.000000e+00> : vector<8x8xf32>
    %35 = tpu.matmul %33, %34, %cst_29 {dimension_numbers = #tpu.dot_dimension_numbers<[1], [1], [0], [0], [0, 0, 1, 0], [], []>} : vector<8x8xbf16>, vector<8x8xbf16>, vector<8x8xf32> -> vector<8x8xf32>
    %36 = vector.broadcast %30 : vector<1x8xf32> to vector<8x8xf32>
    %37 = arith.addf %35, %36 : vector<8x8xf32>
    %cst_30 = arith.constant dense<0xFF800000> : vector<8xf32>
    %38 = vector.multi_reduction <maximumf>, %37, %cst_30 [1] : vector<8x8xf32> to vector<8xf32>
    %39 = vector.shape_cast %38 : vector<8xf32> to vector<8x1xf32>
    %40 = vector.broadcast %39 : vector<8x1xf32> to vector<8x8xf32>
    %41 = arith.subf %37, %40 : vector<8x8xf32>
    %42 = math.exp %41 : vector<8x8xf32>
    %cst_31 = arith.constant dense<0.000000e+00> : vector<8xf32>
    %43 = vector.multi_reduction <add>, %42, %cst_31 [1] : vector<8x8xf32> to vector<8xf32>
    %44 = vector.shape_cast %43 : vector<8xf32> to vector<8x1xf32>
    %45 = tpu.reciprocal %44 {approx = true} : vector<8x1xf32> -> vector<8x1xf32>
    %46 = vector.broadcast %45 : vector<8x1xf32> to vector<8x8xf32>
    %47 = arith.mulf %42, %46 : vector<8x8xf32>
    %48 = arith.truncf %47 : vector<8x8xf32> to vector<8x8xbf16>
    %49 = vector.extract_strided_slice %28 {offsets = [0, 0], sizes = [8, 8], strides = [1, 1]} : vector<8x32xbf16> to vector<8x8xbf16>
    %cst_32 = arith.constant dense<0.000000e+00> : vector<8x8xf32>
    %50 = tpu.matmul %48, %49, %cst_32 {dimension_numbers = #tpu.dot_dimension_numbers<[1], [0], [0], [1], [0, 0, 1, 1], [], []>} : vector<8x8xbf16>, vector<8x8xbf16>, vector<8x8xf32> -> vector<8x8xf32>
    %51 = arith.truncf %50 : vector<8x8xf32> to vector<8x8xbf16>
    %52 = vector.extract_strided_slice %31 {offsets = [0, 0], sizes = [8, 32], strides = [1, 1]} : vector<32x32xbf16> to vector<8x32xbf16>
    %cst_33 = arith.constant dense<0.000000e+00> : vector<8x32xf32>
    %53 = tpu.matmul %51, %52, %cst_33 {dimension_numbers = #tpu.dot_dimension_numbers<[1], [0], [0], [1], [0, 0, 1, 1], [], []>} : vector<8x8xbf16>, vector<8x32xbf16>, vector<8x32xf32> -> vector<8x32xf32>
    %54 = arith.addf %32, %53 : vector<8x32xf32>
    %55 = vector.extract_strided_slice %26 {offsets = [0, 8], sizes = [8, 8], strides = [1, 1]} : vector<8x32xbf16> to vector<8x8xbf16>
    %56 = vector.extract_strided_slice %27 {offsets = [0, 8], sizes = [8, 8], strides = [1, 1]} : vector<8x32xbf16> to vector<8x8xbf16>
    %cst_34 = arith.constant dense<0.000000e+00> : vector<8x8xf32>
    %57 = tpu.matmul %55, %56, %cst_34 {dimension_numbers = #tpu.dot_dimension_numbers<[1], [1], [0], [0], [0, 0, 1, 0], [], []>} : vector<8x8xbf16>, vector<8x8xbf16>, vector<8x8xf32> -> vector<8x8xf32>
    %58 = vector.broadcast %30 : vector<1x8xf32> to vector<8x8xf32>
    %59 = arith.addf %57, %58 : vector<8x8xf32>
    %cst_35 = arith.constant dense<0xFF800000> : vector<8xf32>
    %60 = vector.multi_reduction <maximumf>, %59, %cst_35 [1] : vector<8x8xf32> to vector<8xf32>
    %61 = vector.shape_cast %60 : vector<8xf32> to vector<8x1xf32>
    %62 = vector.broadcast %61 : vector<8x1xf32> to vector<8x8xf32>
    %63 = arith.subf %59, %62 : vector<8x8xf32>
    %64 = math.exp %63 : vector<8x8xf32>
    %cst_36 = arith.constant dense<0.000000e+00> : vector<8xf32>
    %65 = vector.multi_reduction <add>, %64, %cst_36 [1] : vector<8x8xf32> to vector<8xf32>
    %66 = vector.shape_cast %65 : vector<8xf32> to vector<8x1xf32>
    %67 = tpu.reciprocal %66 {approx = true} : vector<8x1xf32> -> vector<8x1xf32>
    %68 = vector.broadcast %67 : vector<8x1xf32> to vector<8x8xf32>
    %69 = arith.mulf %64, %68 : vector<8x8xf32>
    %70 = arith.truncf %69 : vector<8x8xf32> to vector<8x8xbf16>
    %71 = vector.extract_strided_slice %28 {offsets = [0, 8], sizes = [8, 8], strides = [1, 1]} : vector<8x32xbf16> to vector<8x8xbf16>
    %cst_37 = arith.constant dense<0.000000e+00> : vector<8x8xf32>
    %72 = tpu.matmul %70, %71, %cst_37 {dimension_numbers = #tpu.dot_dimension_numbers<[1], [0], [0], [1], [0, 0, 1, 1], [], []>} : vector<8x8xbf16>, vector<8x8xbf16>, vector<8x8xf32> -> vector<8x8xf32>
    %73 = arith.truncf %72 : vector<8x8xf32> to vector<8x8xbf16>
    %74 = vector.extract_strided_slice %31 {offsets = [8, 0], sizes = [8, 32], strides = [1, 1]} : vector<32x32xbf16> to vector<8x32xbf16>
    %cst_38 = arith.constant dense<0.000000e+00> : vector<8x32xf32>
    %75 = tpu.matmul %73, %74, %cst_38 {dimension_numbers = #tpu.dot_dimension_numbers<[1], [0], [0], [1], [0, 0, 1, 1], [], []>} : vector<8x8xbf16>, vector<8x32xbf16>, vector<8x32xf32> -> vector<8x32xf32>
    %76 = arith.addf %54, %75 : vector<8x32xf32>
    %77 = vector.extract_strided_slice %26 {offsets = [0, 16], sizes = [8, 8], strides = [1, 1]} : vector<8x32xbf16> to vector<8x8xbf16>
    %78 = vector.extract_strided_slice %27 {offsets = [0, 16], sizes = [8, 8], strides = [1, 1]} : vector<8x32xbf16> to vector<8x8xbf16>
    %cst_39 = arith.constant dense<0.000000e+00> : vector<8x8xf32>
    %79 = tpu.matmul %77, %78, %cst_39 {dimension_numbers = #tpu.dot_dimension_numbers<[1], [1], [0], [0], [0, 0, 1, 0], [], []>} : vector<8x8xbf16>, vector<8x8xbf16>, vector<8x8xf32> -> vector<8x8xf32>
    %80 = vector.broadcast %30 : vector<1x8xf32> to vector<8x8xf32>
    %81 = arith.addf %79, %80 : vector<8x8xf32>
    %cst_40 = arith.constant dense<0xFF800000> : vector<8xf32>
    %82 = vector.multi_reduction <maximumf>, %81, %cst_40 [1] : vector<8x8xf32> to vector<8xf32>
    %83 = vector.shape_cast %82 : vector<8xf32> to vector<8x1xf32>
    %84 = vector.broadcast %83 : vector<8x1xf32> to vector<8x8xf32>
    %85 = arith.subf %81, %84 : vector<8x8xf32>
    %86 = math.exp %85 : vector<8x8xf32>
    %cst_41 = arith.constant dense<0.000000e+00> : vector<8xf32>
    %87 = vector.multi_reduction <add>, %86, %cst_41 [1] : vector<8x8xf32> to vector<8xf32>
    %88 = vector.shape_cast %87 : vector<8xf32> to vector<8x1xf32>
    %89 = tpu.reciprocal %88 {approx = true} : vector<8x1xf32> -> vector<8x1xf32>
    %90 = vector.broadcast %89 : vector<8x1xf32> to vector<8x8xf32>
    %91 = arith.mulf %86, %90 : vector<8x8xf32>
    %92 = arith.truncf %91 : vector<8x8xf32> to vector<8x8xbf16>
    %93 = vector.extract_strided_slice %28 {offsets = [0, 16], sizes = [8, 8], strides = [1, 1]} : vector<8x32xbf16> to vector<8x8xbf16>
    %cst_42 = arith.constant dense<0.000000e+00> : vector<8x8xf32>
    %94 = tpu.matmul %92, %93, %cst_42 {dimension_numbers = #tpu.dot_dimension_numbers<[1], [0], [0], [1], [0, 0, 1, 1], [], []>} : vector<8x8xbf16>, vector<8x8xbf16>, vector<8x8xf32> -> vector<8x8xf32>
    %95 = arith.truncf %94 : vector<8x8xf32> to vector<8x8xbf16>
    %96 = vector.extract_strided_slice %31 {offsets = [16, 0], sizes = [8, 32], strides = [1, 1]} : vector<32x32xbf16> to vector<8x32xbf16>
    %cst_43 = arith.constant dense<0.000000e+00> : vector<8x32xf32>
    %97 = tpu.matmul %95, %96, %cst_43 {dimension_numbers = #tpu.dot_dimension_numbers<[1], [0], [0], [1], [0, 0, 1, 1], [], []>} : vector<8x8xbf16>, vector<8x32xbf16>, vector<8x32xf32> -> vector<8x32xf32>
    %98 = arith.addf %76, %97 : vector<8x32xf32>
    %99 = vector.extract_strided_slice %26 {offsets = [0, 24], sizes = [8, 8], strides = [1, 1]} : vector<8x32xbf16> to vector<8x8xbf16>
    %100 = vector.extract_strided_slice %27 {offsets = [0, 24], sizes = [8, 8], strides = [1, 1]} : vector<8x32xbf16> to vector<8x8xbf16>
    %cst_44 = arith.constant dense<0.000000e+00> : vector<8x8xf32>
    %101 = tpu.matmul %99, %100, %cst_44 {dimension_numbers = #tpu.dot_dimension_numbers<[1], [1], [0], [0], [0, 0, 1, 0], [], []>} : vector<8x8xbf16>, vector<8x8xbf16>, vector<8x8xf32> -> vector<8x8xf32>
    %102 = vector.broadcast %30 : vector<1x8xf32> to vector<8x8xf32>
    %103 = arith.addf %101, %102 : vector<8x8xf32>
    %cst_45 = arith.constant dense<0xFF800000> : vector<8xf32>
    %104 = vector.multi_reduction <maximumf>, %103, %cst_45 [1] : vector<8x8xf32> to vector<8xf32>
    %105 = vector.shape_cast %104 : vector<8xf32> to vector<8x1xf32>
    %106 = vector.broadcast %105 : vector<8x1xf32> to vector<8x8xf32>
    %107 = arith.subf %103, %106 : vector<8x8xf32>
    %108 = math.exp %107 : vector<8x8xf32>
    %cst_46 = arith.constant dense<0.000000e+00> : vector<8xf32>
    %109 = vector.multi_reduction <add>, %108, %cst_46 [1] : vector<8x8xf32> to vector<8xf32>
    %110 = vector.shape_cast %109 : vector<8xf32> to vector<8x1xf32>
    %111 = tpu.reciprocal %110 {approx = true} : vector<8x1xf32> -> vector<8x1xf32>
    %112 = vector.broadcast %111 : vector<8x1xf32> to vector<8x8xf32>
    %113 = arith.mulf %108, %112 : vector<8x8xf32>
    %114 = arith.truncf %113 : vector<8x8xf32> to vector<8x8xbf16>
    %115 = vector.extract_strided_slice %28 {offsets = [0, 24], sizes = [8, 8], strides = [1, 1]} : vector<8x32xbf16> to vector<8x8xbf16>
    %cst_47 = arith.constant dense<0.000000e+00> : vector<8x8xf32>
    %116 = tpu.matmul %114, %115, %cst_47 {dimension_numbers = #tpu.dot_dimension_numbers<[1], [0], [0], [1], [0, 0, 1, 1], [], []>} : vector<8x8xbf16>, vector<8x8xbf16>, vector<8x8xf32> -> vector<8x8xf32>
    %117 = arith.truncf %116 : vector<8x8xf32> to vector<8x8xbf16>
    %118 = vector.extract_strided_slice %31 {offsets = [24, 0], sizes = [8, 32], strides = [1, 1]} : vector<32x32xbf16> to vector<8x32xbf16>
    %cst_48 = arith.constant dense<0.000000e+00> : vector<8x32xf32>
    %119 = tpu.matmul %117, %118, %cst_48 {dimension_numbers = #tpu.dot_dimension_numbers<[1], [0], [0], [1], [0, 0, 1, 1], [], []>} : vector<8x8xbf16>, vector<8x32xbf16>, vector<8x32xf32> -> vector<8x32xf32>
    %120 = arith.addf %98, %119 : vector<8x32xf32>
    %c0_49 = arith.constant 0 : index
    %c0_50 = arith.constant 0 : index
    %c0_51 = arith.constant 0 : index
    %121 = vector.load %arg4[%c0_49, %c0_50, %c0_51] : memref<1x8x32xf32, #tpu.memory_space<vmem>>, vector<1x8x32xf32>
    %122 = vector.shape_cast %121 : vector<1x8x32xf32> to vector<8x32xf32>
    %123 = arith.addf %122, %120 : vector<8x32xf32>
    %c0_52 = arith.constant 0 : index
    %c0_53 = arith.constant 0 : index
    %124 = vector.load %arg13[%c0_52, %c0_53] : memref<1x32xf32, #tpu.memory_space<vmem>>, vector<1x32xf32>
    %125 = vector.broadcast %124 : vector<1x32xf32> to vector<8x32xf32>
    %126 = arith.addf %123, %125 : vector<8x32xf32>
    %cst_54 = arith.constant dense<0.000000e+00> : vector<8xf32>
    %127 = vector.multi_reduction <add>, %126, %cst_54 [1] : vector<8x32xf32> to vector<8xf32>
    %128 = vector.shape_cast %127 : vector<8xf32> to vector<8x1xf32>
    %cst_55 = arith.constant 3.200000e+01 : f32
    %129 = vector.broadcast %cst_55 : f32 to vector<8x1xf32>
    %130 = arith.divf %128, %129 : vector<8x1xf32>
    %131 = vector.broadcast %130 : vector<8x1xf32> to vector<8x32xf32>
    %132 = arith.subf %126, %131 : vector<8x32xf32>
    %133 = arith.mulf %132, %132 : vector<8x32xf32>
    %cst_56 = arith.constant dense<0.000000e+00> : vector<8xf32>
    %134 = vector.multi_reduction <add>, %133, %cst_56 [1] : vector<8x32xf32> to vector<8xf32>
    %135 = vector.shape_cast %134 : vector<8xf32> to vector<8x1xf32>
    %cst_57 = arith.constant 3.200000e+01 : f32
    %136 = vector.broadcast %cst_57 : f32 to vector<8x1xf32>
    %137 = arith.divf %135, %136 : vector<8x1xf32>
    %138 = vector.broadcast %130 : vector<8x1xf32> to vector<8x32xf32>
    %139 = arith.subf %126, %138 : vector<8x32xf32>
    %cst_58 = arith.constant 9.99999974E-6 : f32
    %140 = vector.broadcast %cst_58 : f32 to vector<8x1xf32>
    %141 = arith.addf %137, %140 : vector<8x1xf32>
    %142 = math.rsqrt %141 : vector<8x1xf32>
    %143 = vector.broadcast %142 : vector<8x1xf32> to vector<8x32xf32>
    %144 = arith.mulf %139, %143 : vector<8x32xf32>
    %c0_59 = arith.constant 0 : index
    %c0_60 = arith.constant 0 : index
    %145 = vector.load %arg14[%c0_59, %c0_60] : memref<1x32xf32, #tpu.memory_space<vmem>>, vector<1x32xf32>
    %146 = vector.broadcast %145 : vector<1x32xf32> to vector<8x32xf32>
    %147 = arith.mulf %144, %146 : vector<8x32xf32>
    %c0_61 = arith.constant 0 : index
    %c0_62 = arith.constant 0 : index
    %148 = vector.load %arg15[%c0_61, %c0_62] : memref<1x32xf32, #tpu.memory_space<vmem>>, vector<1x32xf32>
    %149 = vector.broadcast %148 : vector<1x32xf32> to vector<8x32xf32>
    %150 = arith.addf %147, %149 : vector<8x32xf32>
    %c0_63 = arith.constant 0 : index
    %c0_64 = arith.constant 0 : index
    %c0_65 = arith.constant 0 : index
    %151 = vector.load %arg16[%c0_63, %c0_64, %c0_65] : memref<1x8x32xf32, #tpu.memory_space<vmem>>, vector<1x8x32xf32>
    %152 = vector.shape_cast %151 : vector<1x8x32xf32> to vector<8x32xf32>
    %153 = vector.shape_cast %150 : vector<8x32xf32> to vector<1x8x32xf32>
    tpu.vector_store %arg16[%c0_63, %c0_64, %c0_65], %153 {strides = array<i32>} : memref<1x8x32xf32, #tpu.memory_space<vmem>>, vector<1x8x32xf32>,
    return
  }
  func.func @transform_0(%arg0: i32) -> (i32, i32, i32) {
    %c0_i32 = arith.constant 0 : i32
    %c0_i32_0 = arith.constant 0 : i32
    %c0_i32_1 = arith.constant 0 : i32
    return %arg0, %c0_i32, %c0_i32_0 : i32, i32, i32
  }
  func.func @transform_1(%arg0: i32) -> (i32, i32, i32) {
    %c0_i32 = arith.constant 0 : i32
    %c0_i32_0 = arith.constant 0 : i32
    %c0_i32_1 = arith.constant 0 : i32
    return %arg0, %c0_i32, %c0_i32_0 : i32, i32, i32
  }
  func.func @transform_2(%arg0: i32) -> (i32, i32, i32) {
    %c0_i32 = arith.constant 0 : i32
    %c0_i32_0 = arith.constant 0 : i32
    %c0_i32_1 = arith.constant 0 : i32
    return %arg0, %c0_i32, %c0_i32_0 : i32, i32, i32
  }
  func.func @transform_3(%arg0: i32) -> (i32, i32, i32) {
    %c0_i32 = arith.constant 0 : i32
    %c0_i32_0 = arith.constant 0 : i32
    %c0_i32_1 = arith.constant 0 : i32
    return %arg0, %c0_i32, %c0_i32_0 : i32, i32, i32
  }
  func.func @transform_4(%arg0: i32) -> (i32, i32, i32) {
    %c0_i32 = arith.constant 0 : i32
    %c0_i32_0 = arith.constant 0 : i32
    %c0_i32_1 = arith.constant 0 : i32
    return %arg0, %c0_i32, %c0_i32_0 : i32, i32, i32
  }
  func.func @transform_5(%arg0: i32) -> (i32, i32) {
    %c0_i32 = arith.constant 0 : i32
    %c0_i32_0 = arith.constant 0 : i32
    %c0_i32_1 = arith.constant 0 : i32
    return %c0_i32, %c0_i32_0 : i32, i32
  }
  func.func @transform_6(%arg0: i32) -> (i32, i32) {
    %c0_i32 = arith.constant 0 : i32
    %c0_i32_0 = arith.constant 0 : i32
    %c0_i32_1 = arith.constant 0 : i32
    return %c0_i32, %c0_i32_0 : i32, i32
  }
  func.func @transform_7(%arg0: i32) -> (i32, i32) {
    %c0_i32 = arith.constant 0 : i32
    %c0_i32_0 = arith.constant 0 : i32
    %c0_i32_1 = arith.constant 0 : i32
    return %c0_i32, %c0_i32_0 : i32, i32
  }
  func.func @transform_8(%arg0: i32) -> (i32, i32) {
    %c0_i32 = arith.constant 0 : i32
    %c0_i32_0 = arith.constant 0 : i32
    %c0_i32_1 = arith.constant 0 : i32
    return %c0_i32, %c0_i32_0 : i32, i32
  }
  func.func @transform_9(%arg0: i32) -> (i32, i32) {
    %c0_i32 = arith.constant 0 : i32
    %c0_i32_0 = arith.constant 0 : i32
    %c0_i32_1 = arith.constant 0 : i32
    return %c0_i32, %c0_i32_0 : i32, i32
  }
  func.func @transform_10(%arg0: i32) -> (i32, i32) {
    %c0_i32 = arith.constant 0 : i32
    %c0_i32_0 = arith.constant 0 : i32
    %c0_i32_1 = arith.constant 0 : i32
    return %c0_i32, %c0_i32_0 : i32, i32
  }
  func.func @transform_11(%arg0: i32) -> (i32, i32) {
    %c0_i32 = arith.constant 0 : i32
    %c0_i32_0 = arith.constant 0 : i32
    %c0_i32_1 = arith.constant 0 : i32
    return %c0_i32, %c0_i32_0 : i32, i32
  }
  func.func @transform_12(%arg0: i32) -> (i32, i32) {
    %c0_i32 = arith.constant 0 : i32
    %c0_i32_0 = arith.constant 0 : i32
    %c0_i32_1 = arith.constant 0 : i32
    return %c0_i32, %c0_i32_0 : i32, i32
  }
  func.func @transform_13(%arg0: i32) -> (i32, i32) {
    %c0_i32 = arith.constant 0 : i32
    %c0_i32_0 = arith.constant 0 : i32
    %c0_i32_1 = arith.constant 0 : i32
    return %c0_i32, %c0_i32_0 : i32, i32
  }
  func.func @transform_14(%arg0: i32) -> (i32, i32) {
    %c0_i32 = arith.constant 0 : i32
    %c0_i32_0 = arith.constant 0 : i32
    %c0_i32_1 = arith.constant 0 : i32
    return %c0_i32, %c0_i32_0 : i32, i32
  }
  func.func @transform_15(%arg0: i32) -> (i32, i32, i32) {
    %c0_i32 = arith.constant 0 : i32
    %c0_i32_0 = arith.constant 0 : i32
    %c0_i32_1 = arith.constant 0 : i32
    return %arg0, %c0_i32, %c0_i32_0 : i32, i32, i32
  }
}

module attributes {stable_mosaic.version = 11 : i64} {
  func.func @_ffn_kernel(%arg0: i32, %arg1: memref<16x32xf32, #tpu.memory_space<vmem>>, %arg2: memref<32x64xbf16, #tpu.memory_space<vmem>>, %arg3: memref<1x64xf32, #tpu.memory_space<vmem>>, %arg4: memref<64x32xbf16, #tpu.memory_space<vmem>>, %arg5: memref<1x32xf32, #tpu.memory_space<vmem>>, %arg6: memref<1x32xf32, #tpu.memory_space<vmem>>, %arg7: memref<1x32xf32, #tpu.memory_space<vmem>>, %arg8: memref<16x32xf32, #tpu.memory_space<vmem>>) attributes {dimension_semantics = [#tpu.dimension_semantics<parallel>], iteration_bounds = array<i64: 1>, scalar_prefetch = 0 : i64, scratch_operands = 0 : i64, tpu.core_type = #tpu.core_type<tc>, window_params = [{transform_indices = @transform_0, window_bounds = array<i64: 16, 32>}, {pipeline_mode = #tpu.pipeline_mode<synchronous>, transform_indices = @transform_1, window_bounds = array<i64: 32, 64>}, {pipeline_mode = #tpu.pipeline_mode<synchronous>, transform_indices = @transform_2, window_bounds = array<i64: 1, 64>}, {pipeline_mode = #tpu.pipeline_mode<synchronous>, transform_indices = @transform_3, window_bounds = array<i64: 64, 32>}, {pipeline_mode = #tpu.pipeline_mode<synchronous>, transform_indices = @transform_4, window_bounds = array<i64: 1, 32>}, {pipeline_mode = #tpu.pipeline_mode<synchronous>, transform_indices = @transform_5, window_bounds = array<i64: 1, 32>}, {pipeline_mode = #tpu.pipeline_mode<synchronous>, transform_indices = @transform_6, window_bounds = array<i64: 1, 32>}, {transform_indices = @transform_7, window_bounds = array<i64: 16, 32>}]} {
    %c0 = arith.constant 0 : index
    %c0_0 = arith.constant 0 : index
    %0 = vector.load %arg1[%c0, %c0_0] : memref<16x32xf32, #tpu.memory_space<vmem>>, vector<16x32xf32>
    %1 = arith.truncf %0 : vector<16x32xf32> to vector<16x32xbf16>
    %c0_1 = arith.constant 0 : index
    %c0_2 = arith.constant 0 : index
    %2 = vector.load %arg2[%c0_1, %c0_2] : memref<32x64xbf16, #tpu.memory_space<vmem>>, vector<32x64xbf16>
    %cst = arith.constant dense<0.000000e+00> : vector<16x64xf32>
    %3 = tpu.matmul %1, %2, %cst {dimension_numbers = #tpu.dot_dimension_numbers<[1], [0], [0], [1], [0, 0, 1, 1], [], []>} : vector<16x32xbf16>, vector<32x64xbf16>, vector<16x64xf32> -> vector<16x64xf32>
    %c0_3 = arith.constant 0 : index
    %c0_4 = arith.constant 0 : index
    %4 = vector.load %arg3[%c0_3, %c0_4] : memref<1x64xf32, #tpu.memory_space<vmem>>, vector<1x64xf32>
    %5 = vector.broadcast %4 : vector<1x64xf32> to vector<16x64xf32>
    %6 = arith.addf %3, %5 : vector<16x64xf32>
    %cst_5 = arith.constant 0.000000e+00 : f32
    %7 = vector.broadcast %cst_5 : f32 to vector<16x64xf32>
    %8 = arith.maximumf %6, %7 : vector<16x64xf32>
    %9 = arith.truncf %8 : vector<16x64xf32> to vector<16x64xbf16>
    %c0_6 = arith.constant 0 : index
    %c0_7 = arith.constant 0 : index
    %10 = vector.load %arg4[%c0_6, %c0_7] : memref<64x32xbf16, #tpu.memory_space<vmem>>, vector<64x32xbf16>
    %cst_8 = arith.constant dense<0.000000e+00> : vector<16x32xf32>
    %11 = tpu.matmul %9, %10, %cst_8 {dimension_numbers = #tpu.dot_dimension_numbers<[1], [0], [0], [1], [0, 0, 1, 1], [], []>} : vector<16x64xbf16>, vector<64x32xbf16>, vector<16x32xf32> -> vector<16x32xf32>
    %c0_9 = arith.constant 0 : index
    %c0_10 = arith.constant 0 : index
    %12 = vector.load %arg5[%c0_9, %c0_10] : memref<1x32xf32, #tpu.memory_space<vmem>>, vector<1x32xf32>
    %13 = vector.broadcast %12 : vector<1x32xf32> to vector<16x32xf32>
    %14 = arith.addf %11, %13 : vector<16x32xf32>
    %15 = arith.addf %0, %14 : vector<16x32xf32>
    %cst_11 = arith.constant dense<0.000000e+00> : vector<16xf32>
    %16 = vector.multi_reduction <add>, %15, %cst_11 [1] : vector<16x32xf32> to vector<16xf32>
    %17 = vector.shape_cast %16 : vector<16xf32> to vector<16x1xf32>
    %cst_12 = arith.constant 3.200000e+01 : f32
    %18 = vector.broadcast %cst_12 : f32 to vector<16x1xf32>
    %19 = arith.divf %17, %18 : vector<16x1xf32>
    %20 = vector.broadcast %19 : vector<16x1xf32> to vector<16x32xf32>
    %21 = arith.subf %15, %20 : vector<16x32xf32>
    %22 = arith.mulf %21, %21 : vector<16x32xf32>
    %cst_13 = arith.constant dense<0.000000e+00> : vector<16xf32>
    %23 = vector.multi_reduction <add>, %22, %cst_13 [1] : vector<16x32xf32> to vector<16xf32>
    %24 = vector.shape_cast %23 : vector<16xf32> to vector<16x1xf32>
    %cst_14 = arith.constant 3.200000e+01 : f32
    %25 = vector.broadcast %cst_14 : f32 to vector<16x1xf32>
    %26 = arith.divf %24, %25 : vector<16x1xf32>
    %27 = vector.broadcast %19 : vector<16x1xf32> to vector<16x32xf32>
    %28 = arith.subf %15, %27 : vector<16x32xf32>
    %cst_15 = arith.constant 9.99999974E-6 : f32
    %29 = vector.broadcast %cst_15 : f32 to vector<16x1xf32>
    %30 = arith.addf %26, %29 : vector<16x1xf32>
    %31 = math.rsqrt %30 : vector<16x1xf32>
    %32 = vector.broadcast %31 : vector<16x1xf32> to vector<16x32xf32>
    %33 = arith.mulf %28, %32 : vector<16x32xf32>
    %c0_16 = arith.constant 0 : index
    %c0_17 = arith.constant 0 : index
    %34 = vector.load %arg6[%c0_16, %c0_17] : memref<1x32xf32, #tpu.memory_space<vmem>>, vector<1x32xf32>
    %35 = vector.broadcast %34 : vector<1x32xf32> to vector<16x32xf32>
    %36 = arith.mulf %33, %35 : vector<16x32xf32>
    %c0_18 = arith.constant 0 : index
    %c0_19 = arith.constant 0 : index
    %37 = vector.load %arg7[%c0_18, %c0_19] : memref<1x32xf32, #tpu.memory_space<vmem>>, vector<1x32xf32>
    %38 = vector.broadcast %37 : vector<1x32xf32> to vector<16x32xf32>
    %39 = arith.addf %36, %38 : vector<16x32xf32>
    %c0_20 = arith.constant 0 : index
    %c0_21 = arith.constant 0 : index
    %40 = vector.load %arg8[%c0_20, %c0_21] : memref<16x32xf32, #tpu.memory_space<vmem>>, vector<16x32xf32>
    tpu.vector_store %arg8[%c0_20, %c0_21], %39 {strides = array<i32>} : memref<16x32xf32, #tpu.memory_space<vmem>>, vector<16x32xf32>,
    return
  }
  func.func @transform_0(%arg0: i32) -> (i32, i32) {
    %c0_i32 = arith.constant 0 : i32
    %c0_i32_0 = arith.constant 0 : i32
    return %arg0, %c0_i32 : i32, i32
  }
  func.func @transform_1(%arg0: i32) -> (i32, i32) {
    %c0_i32 = arith.constant 0 : i32
    %c0_i32_0 = arith.constant 0 : i32
    %c0_i32_1 = arith.constant 0 : i32
    return %c0_i32, %c0_i32_0 : i32, i32
  }
  func.func @transform_2(%arg0: i32) -> (i32, i32) {
    %c0_i32 = arith.constant 0 : i32
    %c0_i32_0 = arith.constant 0 : i32
    %c0_i32_1 = arith.constant 0 : i32
    return %c0_i32, %c0_i32_0 : i32, i32
  }
  func.func @transform_3(%arg0: i32) -> (i32, i32) {
    %c0_i32 = arith.constant 0 : i32
    %c0_i32_0 = arith.constant 0 : i32
    %c0_i32_1 = arith.constant 0 : i32
    return %c0_i32, %c0_i32_0 : i32, i32
  }
  func.func @transform_4(%arg0: i32) -> (i32, i32) {
    %c0_i32 = arith.constant 0 : i32
    %c0_i32_0 = arith.constant 0 : i32
    %c0_i32_1 = arith.constant 0 : i32
    return %c0_i32, %c0_i32_0 : i32, i32
  }
  func.func @transform_5(%arg0: i32) -> (i32, i32) {
    %c0_i32 = arith.constant 0 : i32
    %c0_i32_0 = arith.constant 0 : i32
    %c0_i32_1 = arith.constant 0 : i32
    return %c0_i32, %c0_i32_0 : i32, i32
  }
  func.func @transform_6(%arg0: i32) -> (i32, i32) {
    %c0_i32 = arith.constant 0 : i32
    %c0_i32_0 = arith.constant 0 : i32
    %c0_i32_1 = arith.constant 0 : i32
    return %c0_i32, %c0_i32_0 : i32, i32
  }
  func.func @transform_7(%arg0: i32) -> (i32, i32) {
    %c0_i32 = arith.constant 0 : i32
    %c0_i32_0 = arith.constant 0 : i32
    return %arg0, %c0_i32 : i32, i32
  }
}

module attributes {stable_mosaic.version = 11 : i64} {
  func.func @_attn_block_kernel(%arg0: i32, %arg1: memref<1x8x32xf32, #tpu.memory_space<vmem>>, %arg2: memref<1x16x32xf32, #tpu.memory_space<vmem>>, %arg3: memref<1x16x32xf32, #tpu.memory_space<vmem>>, %arg4: memref<1x8x32xf32, #tpu.memory_space<vmem>>, %arg5: memref<1x1x16xf32, #tpu.memory_space<vmem>>, %arg6: memref<32x32xbf16, #tpu.memory_space<vmem>>, %arg7: memref<32x32xbf16, #tpu.memory_space<vmem>>, %arg8: memref<32x32xbf16, #tpu.memory_space<vmem>>, %arg9: memref<1x32xf32, #tpu.memory_space<vmem>>, %arg10: memref<1x32xf32, #tpu.memory_space<vmem>>, %arg11: memref<1x32xf32, #tpu.memory_space<vmem>>, %arg12: memref<32x32xbf16, #tpu.memory_space<vmem>>, %arg13: memref<1x32xf32, #tpu.memory_space<vmem>>, %arg14: memref<1x32xf32, #tpu.memory_space<vmem>>, %arg15: memref<1x32xf32, #tpu.memory_space<vmem>>, %arg16: memref<1x8x32xf32, #tpu.memory_space<vmem>>) attributes {dimension_semantics = [#tpu.dimension_semantics<parallel>], iteration_bounds = array<i64: 2>, scalar_prefetch = 0 : i64, scratch_operands = 0 : i64, tpu.core_type = #tpu.core_type<tc>, window_params = [{transform_indices = @transform_0, window_bounds = array<i64: 1, 8, 32>}, {transform_indices = @transform_1, window_bounds = array<i64: 1, 16, 32>}, {transform_indices = @transform_2, window_bounds = array<i64: 1, 16, 32>}, {transform_indices = @transform_3, window_bounds = array<i64: 1, 8, 32>}, {transform_indices = @transform_4, window_bounds = array<i64: 1, 1, 16>}, {pipeline_mode = #tpu.pipeline_mode<synchronous>, transform_indices = @transform_5, window_bounds = array<i64: 32, 32>}, {pipeline_mode = #tpu.pipeline_mode<synchronous>, transform_indices = @transform_6, window_bounds = array<i64: 32, 32>}, {pipeline_mode = #tpu.pipeline_mode<synchronous>, transform_indices = @transform_7, window_bounds = array<i64: 32, 32>}, {pipeline_mode = #tpu.pipeline_mode<synchronous>, transform_indices = @transform_8, window_bounds = array<i64: 1, 32>}, {pipeline_mode = #tpu.pipeline_mode<synchronous>, transform_indices = @transform_9, window_bounds = array<i64: 1, 32>}, {pipeline_mode = #tpu.pipeline_mode<synchronous>, transform_indices = @transform_10, window_bounds = array<i64: 1, 32>}, {pipeline_mode = #tpu.pipeline_mode<synchronous>, transform_indices = @transform_11, window_bounds = array<i64: 32, 32>}, {pipeline_mode = #tpu.pipeline_mode<synchronous>, transform_indices = @transform_12, window_bounds = array<i64: 1, 32>}, {pipeline_mode = #tpu.pipeline_mode<synchronous>, transform_indices = @transform_13, window_bounds = array<i64: 1, 32>}, {pipeline_mode = #tpu.pipeline_mode<synchronous>, transform_indices = @transform_14, window_bounds = array<i64: 1, 32>}, {transform_indices = @transform_15, window_bounds = array<i64: 1, 8, 32>}]} {
    %c0 = arith.constant 0 : index
    %c0_0 = arith.constant 0 : index
    %c0_1 = arith.constant 0 : index
    %0 = vector.load %arg1[%c0, %c0_0, %c0_1] : memref<1x8x32xf32, #tpu.memory_space<vmem>>, vector<1x8x32xf32>
    %1 = vector.shape_cast %0 : vector<1x8x32xf32> to vector<8x32xf32>
    %2 = arith.truncf %1 : vector<8x32xf32> to vector<8x32xbf16>
    %c0_2 = arith.constant 0 : index
    %c0_3 = arith.constant 0 : index
    %c0_4 = arith.constant 0 : index
    %3 = vector.load %arg2[%c0_2, %c0_3, %c0_4] : memref<1x16x32xf32, #tpu.memory_space<vmem>>, vector<1x16x32xf32>
    %4 = vector.shape_cast %3 : vector<1x16x32xf32> to vector<16x32xf32>
    %5 = arith.truncf %4 : vector<16x32xf32> to vector<16x32xbf16>
    %c0_5 = arith.constant 0 : index
    %c0_6 = arith.constant 0 : index
    %c0_7 = arith.constant 0 : index
    %6 = vector.load %arg3[%c0_5, %c0_6, %c0_7] : memref<1x16x32xf32, #tpu.memory_space<vmem>>, vector<1x16x32xf32>
    %7 = vector.shape_cast %6 : vector<1x16x32xf32> to vector<16x32xf32>
    %8 = arith.truncf %7 : vector<16x32xf32> to vector<16x32xbf16>
    %c0_8 = arith.constant 0 : index
    %c0_9 = arith.constant 0 : index
    %9 = vector.load %arg6[%c0_8, %c0_9] : memref<32x32xbf16, #tpu.memory_space<vmem>>, vector<32x32xbf16>
    %cst = arith.constant dense<0.000000e+00> : vector<8x32xf32>
    %10 = tpu.matmul %2, %9, %cst {dimension_numbers = #tpu.dot_dimension_numbers<[1], [0], [0], [1], [0, 0, 1, 1], [], []>} : vector<8x32xbf16>, vector<32x32xbf16>, vector<8x32xf32> -> vector<8x32xf32>
    %c0_10 = arith.constant 0 : index
    %c0_11 = arith.constant 0 : index
    %11 = vector.load %arg9[%c0_10, %c0_11] : memref<1x32xf32, #tpu.memory_space<vmem>>, vector<1x32xf32>
    %12 = vector.broadcast %11 : vector<1x32xf32> to vector<8x32xf32>
    %13 = arith.addf %10, %12 : vector<8x32xf32>
    %c0_12 = arith.constant 0 : index
    %c0_13 = arith.constant 0 : index
    %14 = vector.load %arg7[%c0_12, %c0_13] : memref<32x32xbf16, #tpu.memory_space<vmem>>, vector<32x32xbf16>
    %cst_14 = arith.constant dense<0.000000e+00> : vector<16x32xf32>
    %15 = tpu.matmul %5, %14, %cst_14 {dimension_numbers = #tpu.dot_dimension_numbers<[1], [0], [0], [1], [0, 0, 1, 1], [], []>} : vector<16x32xbf16>, vector<32x32xbf16>, vector<16x32xf32> -> vector<16x32xf32>
    %c0_15 = arith.constant 0 : index
    %c0_16 = arith.constant 0 : index
    %16 = vector.load %arg10[%c0_15, %c0_16] : memref<1x32xf32, #tpu.memory_space<vmem>>, vector<1x32xf32>
    %17 = vector.broadcast %16 : vector<1x32xf32> to vector<16x32xf32>
    %18 = arith.addf %15, %17 : vector<16x32xf32>
    %c0_17 = arith.constant 0 : index
    %c0_18 = arith.constant 0 : index
    %19 = vector.load %arg8[%c0_17, %c0_18] : memref<32x32xbf16, #tpu.memory_space<vmem>>, vector<32x32xbf16>
    %cst_19 = arith.constant dense<0.000000e+00> : vector<16x32xf32>
    %20 = tpu.matmul %8, %19, %cst_19 {dimension_numbers = #tpu.dot_dimension_numbers<[1], [0], [0], [1], [0, 0, 1, 1], [], []>} : vector<16x32xbf16>, vector<32x32xbf16>, vector<16x32xf32> -> vector<16x32xf32>
    %c0_20 = arith.constant 0 : index
    %c0_21 = arith.constant 0 : index
    %21 = vector.load %arg11[%c0_20, %c0_21] : memref<1x32xf32, #tpu.memory_space<vmem>>, vector<1x32xf32>
    %22 = vector.broadcast %21 : vector<1x32xf32> to vector<16x32xf32>
    %23 = arith.addf %20, %22 : vector<16x32xf32>
    %cst_22 = arith.constant 0.353553385 : f32
    %24 = vector.broadcast %cst_22 : f32 to vector<8x32xf32>
    %25 = arith.mulf %13, %24 : vector<8x32xf32>
    %26 = arith.truncf %25 : vector<8x32xf32> to vector<8x32xbf16>
    %27 = arith.truncf %18 : vector<16x32xf32> to vector<16x32xbf16>
    %28 = arith.truncf %23 : vector<16x32xf32> to vector<16x32xbf16>
    %c0_23 = arith.constant 0 : index
    %c0_24 = arith.constant 0 : index
    %c0_25 = arith.constant 0 : index
    %29 = vector.load %arg5[%c0_23, %c0_24, %c0_25] : memref<1x1x16xf32, #tpu.memory_space<vmem>>, vector<1x1x16xf32>
    %30 = vector.shape_cast %29 : vector<1x1x16xf32> to vector<1x16xf32>
    %c0_26 = arith.constant 0 : index
    %c0_27 = arith.constant 0 : index
    %31 = vector.load %arg12[%c0_26, %c0_27] : memref<32x32xbf16, #tpu.memory_space<vmem>>, vector<32x32xbf16>
    %cst_28 = arith.constant 0.000000e+00 : f32
    %32 = vector.broadcast %cst_28 : f32 to vector<8x32xf32>
    %33 = vector.extract_strided_slice %26 {offsets = [0, 0], sizes = [8, 8], strides = [1, 1]} : vector<8x32xbf16> to vector<8x8xbf16>
    %34 = vector.extract_strided_slice %27 {offsets = [0, 0], sizes = [16, 8], strides = [1, 1]} : vector<16x32xbf16> to vector<16x8xbf16>
    %cst_29 = arith.constant dense<0.000000e+00> : vector<8x16xf32>
    %35 = tpu.matmul %33, %34, %cst_29 {dimension_numbers = #tpu.dot_dimension_numbers<[1], [1], [0], [0], [0, 0, 1, 0], [], []>} : vector<8x8xbf16>, vector<16x8xbf16>, vector<8x16xf32> -> vector<8x16xf32>
    %36 = vector.broadcast %30 : vector<1x16xf32> to vector<8x16xf32>
    %37 = arith.addf %35, %36 : vector<8x16xf32>
    %cst_30 = arith.constant dense<0xFF800000> : vector<8xf32>
    %38 = vector.multi_reduction <maximumf>, %37, %cst_30 [1] : vector<8x16xf32> to vector<8xf32>
    %39 = vector.shape_cast %38 : vector<8xf32> to vector<8x1xf32>
    %40 = vector.broadcast %39 : vector<8x1xf32> to vector<8x16xf32>
    %41 = arith.subf %37, %40 : vector<8x16xf32>
    %42 = math.exp %41 : vector<8x16xf32>
    %cst_31 = arith.constant dense<0.000000e+00> : vector<8xf32>
    %43 = vector.multi_reduction <add>, %42, %cst_31 [1] : vector<8x16xf32> to vector<8xf32>
    %44 = vector.shape_cast %43 : vector<8xf32> to vector<8x1xf32>
    %45 = tpu.reciprocal %44 {approx = true} : vector<8x1xf32> -> vector<8x1xf32>
    %46 = vector.broadcast %45 : vector<8x1xf32> to vector<8x16xf32>
    %47 = arith.mulf %42, %46 : vector<8x16xf32>
    %48 = arith.truncf %47 : vector<8x16xf32> to vector<8x16xbf16>
    %49 = vector.extract_strided_slice %28 {offsets = [0, 0], sizes = [16, 8], strides = [1, 1]} : vector<16x32xbf16> to vector<16x8xbf16>
    %cst_32 = arith.constant dense<0.000000e+00> : vector<8x8xf32>
    %50 = tpu.matmul %48, %49, %cst_32 {dimension_numbers = #tpu.dot_dimension_numbers<[1], [0], [0], [1], [0, 0, 1, 1], [], []>} : vector<8x16xbf16>, vector<16x8xbf16>, vector<8x8xf32> -> vector<8x8xf32>
    %51 = arith.truncf %50 : vector<8x8xf32> to vector<8x8xbf16>
    %52 = vector.extract_strided_slice %31 {offsets = [0, 0], sizes = [8, 32], strides = [1, 1]} : vector<32x32xbf16> to vector<8x32xbf16>
    %cst_33 = arith.constant dense<0.000000e+00> : vector<8x32xf32>
    %53 = tpu.matmul %51, %52, %cst_33 {dimension_numbers = #tpu.dot_dimension_numbers<[1], [0], [0], [1], [0, 0, 1, 1], [], []>} : vector<8x8xbf16>, vector<8x32xbf16>, vector<8x32xf32> -> vector<8x32xf32>
    %54 = arith.addf %32, %53 : vector<8x32xf32>
    %55 = vector.extract_strided_slice %26 {offsets = [0, 8], sizes = [8, 8], strides = [1, 1]} : vector<8x32xbf16> to vector<8x8xbf16>
    %56 = vector.extract_strided_slice %27 {offsets = [0, 8], sizes = [16, 8], strides = [1, 1]} : vector<16x32xbf16> to vector<16x8xbf16>
    %cst_34 = arith.constant dense<0.000000e+00> : vector<8x16xf32>
    %57 = tpu.matmul %55, %56, %cst_34 {dimension_numbers = #tpu.dot_dimension_numbers<[1], [1], [0], [0], [0, 0, 1, 0], [], []>} : vector<8x8xbf16>, vector<16x8xbf16>, vector<8x16xf32> -> vector<8x16xf32>
    %58 = vector.broadcast %30 : vector<1x16xf32> to vector<8x16xf32>
    %59 = arith.addf %57, %58 : vector<8x16xf32>
    %cst_35 = arith.constant dense<0xFF800000> : vector<8xf32>
    %60 = vector.multi_reduction <maximumf>, %59, %cst_35 [1] : vector<8x16xf32> to vector<8xf32>
    %61 = vector.shape_cast %60 : vector<8xf32> to vector<8x1xf32>
    %62 = vector.broadcast %61 : vector<8x1xf32> to vector<8x16xf32>
    %63 = arith.subf %59, %62 : vector<8x16xf32>
    %64 = math.exp %63 : vector<8x16xf32>
    %cst_36 = arith.constant dense<0.000000e+00> : vector<8xf32>
    %65 = vector.multi_reduction <add>, %64, %cst_36 [1] : vector<8x16xf32> to vector<8xf32>
    %66 = vector.shape_cast %65 : vector<8xf32> to vector<8x1xf32>
    %67 = tpu.reciprocal %66 {approx = true} : vector<8x1xf32> -> vector<8x1xf32>
    %68 = vector.broadcast %67 : vector<8x1xf32> to vector<8x16xf32>
    %69 = arith.mulf %64, %68 : vector<8x16xf32>
    %70 = arith.truncf %69 : vector<8x16xf32> to vector<8x16xbf16>
    %71 = vector.extract_strided_slice %28 {offsets = [0, 8], sizes = [16, 8], strides = [1, 1]} : vector<16x32xbf16> to vector<16x8xbf16>
    %cst_37 = arith.constant dense<0.000000e+00> : vector<8x8xf32>
    %72 = tpu.matmul %70, %71, %cst_37 {dimension_numbers = #tpu.dot_dimension_numbers<[1], [0], [0], [1], [0, 0, 1, 1], [], []>} : vector<8x16xbf16>, vector<16x8xbf16>, vector<8x8xf32> -> vector<8x8xf32>
    %73 = arith.truncf %72 : vector<8x8xf32> to vector<8x8xbf16>
    %74 = vector.extract_strided_slice %31 {offsets = [8, 0], sizes = [8, 32], strides = [1, 1]} : vector<32x32xbf16> to vector<8x32xbf16>
    %cst_38 = arith.constant dense<0.000000e+00> : vector<8x32xf32>
    %75 = tpu.matmul %73, %74, %cst_38 {dimension_numbers = #tpu.dot_dimension_numbers<[1], [0], [0], [1], [0, 0, 1, 1], [], []>} : vector<8x8xbf16>, vector<8x32xbf16>, vector<8x32xf32> -> vector<8x32xf32>
    %76 = arith.addf %54, %75 : vector<8x32xf32>
    %77 = vector.extract_strided_slice %26 {offsets = [0, 16], sizes = [8, 8], strides = [1, 1]} : vector<8x32xbf16> to vector<8x8xbf16>
    %78 = vector.extract_strided_slice %27 {offsets = [0, 16], sizes = [16, 8], strides = [1, 1]} : vector<16x32xbf16> to vector<16x8xbf16>
    %cst_39 = arith.constant dense<0.000000e+00> : vector<8x16xf32>
    %79 = tpu.matmul %77, %78, %cst_39 {dimension_numbers = #tpu.dot_dimension_numbers<[1], [1], [0], [0], [0, 0, 1, 0], [], []>} : vector<8x8xbf16>, vector<16x8xbf16>, vector<8x16xf32> -> vector<8x16xf32>
    %80 = vector.broadcast %30 : vector<1x16xf32> to vector<8x16xf32>
    %81 = arith.addf %79, %80 : vector<8x16xf32>
    %cst_40 = arith.constant dense<0xFF800000> : vector<8xf32>
    %82 = vector.multi_reduction <maximumf>, %81, %cst_40 [1] : vector<8x16xf32> to vector<8xf32>
    %83 = vector.shape_cast %82 : vector<8xf32> to vector<8x1xf32>
    %84 = vector.broadcast %83 : vector<8x1xf32> to vector<8x16xf32>
    %85 = arith.subf %81, %84 : vector<8x16xf32>
    %86 = math.exp %85 : vector<8x16xf32>
    %cst_41 = arith.constant dense<0.000000e+00> : vector<8xf32>
    %87 = vector.multi_reduction <add>, %86, %cst_41 [1] : vector<8x16xf32> to vector<8xf32>
    %88 = vector.shape_cast %87 : vector<8xf32> to vector<8x1xf32>
    %89 = tpu.reciprocal %88 {approx = true} : vector<8x1xf32> -> vector<8x1xf32>
    %90 = vector.broadcast %89 : vector<8x1xf32> to vector<8x16xf32>
    %91 = arith.mulf %86, %90 : vector<8x16xf32>
    %92 = arith.truncf %91 : vector<8x16xf32> to vector<8x16xbf16>
    %93 = vector.extract_strided_slice %28 {offsets = [0, 16], sizes = [16, 8], strides = [1, 1]} : vector<16x32xbf16> to vector<16x8xbf16>
    %cst_42 = arith.constant dense<0.000000e+00> : vector<8x8xf32>
    %94 = tpu.matmul %92, %93, %cst_42 {dimension_numbers = #tpu.dot_dimension_numbers<[1], [0], [0], [1], [0, 0, 1, 1], [], []>} : vector<8x16xbf16>, vector<16x8xbf16>, vector<8x8xf32> -> vector<8x8xf32>
    %95 = arith.truncf %94 : vector<8x8xf32> to vector<8x8xbf16>
    %96 = vector.extract_strided_slice %31 {offsets = [16, 0], sizes = [8, 32], strides = [1, 1]} : vector<32x32xbf16> to vector<8x32xbf16>
    %cst_43 = arith.constant dense<0.000000e+00> : vector<8x32xf32>
    %97 = tpu.matmul %95, %96, %cst_43 {dimension_numbers = #tpu.dot_dimension_numbers<[1], [0], [0], [1], [0, 0, 1, 1], [], []>} : vector<8x8xbf16>, vector<8x32xbf16>, vector<8x32xf32> -> vector<8x32xf32>
    %98 = arith.addf %76, %97 : vector<8x32xf32>
    %99 = vector.extract_strided_slice %26 {offsets = [0, 24], sizes = [8, 8], strides = [1, 1]} : vector<8x32xbf16> to vector<8x8xbf16>
    %100 = vector.extract_strided_slice %27 {offsets = [0, 24], sizes = [16, 8], strides = [1, 1]} : vector<16x32xbf16> to vector<16x8xbf16>
    %cst_44 = arith.constant dense<0.000000e+00> : vector<8x16xf32>
    %101 = tpu.matmul %99, %100, %cst_44 {dimension_numbers = #tpu.dot_dimension_numbers<[1], [1], [0], [0], [0, 0, 1, 0], [], []>} : vector<8x8xbf16>, vector<16x8xbf16>, vector<8x16xf32> -> vector<8x16xf32>
    %102 = vector.broadcast %30 : vector<1x16xf32> to vector<8x16xf32>
    %103 = arith.addf %101, %102 : vector<8x16xf32>
    %cst_45 = arith.constant dense<0xFF800000> : vector<8xf32>
    %104 = vector.multi_reduction <maximumf>, %103, %cst_45 [1] : vector<8x16xf32> to vector<8xf32>
    %105 = vector.shape_cast %104 : vector<8xf32> to vector<8x1xf32>
    %106 = vector.broadcast %105 : vector<8x1xf32> to vector<8x16xf32>
    %107 = arith.subf %103, %106 : vector<8x16xf32>
    %108 = math.exp %107 : vector<8x16xf32>
    %cst_46 = arith.constant dense<0.000000e+00> : vector<8xf32>
    %109 = vector.multi_reduction <add>, %108, %cst_46 [1] : vector<8x16xf32> to vector<8xf32>
    %110 = vector.shape_cast %109 : vector<8xf32> to vector<8x1xf32>
    %111 = tpu.reciprocal %110 {approx = true} : vector<8x1xf32> -> vector<8x1xf32>
    %112 = vector.broadcast %111 : vector<8x1xf32> to vector<8x16xf32>
    %113 = arith.mulf %108, %112 : vector<8x16xf32>
    %114 = arith.truncf %113 : vector<8x16xf32> to vector<8x16xbf16>
    %115 = vector.extract_strided_slice %28 {offsets = [0, 24], sizes = [16, 8], strides = [1, 1]} : vector<16x32xbf16> to vector<16x8xbf16>
    %cst_47 = arith.constant dense<0.000000e+00> : vector<8x8xf32>
    %116 = tpu.matmul %114, %115, %cst_47 {dimension_numbers = #tpu.dot_dimension_numbers<[1], [0], [0], [1], [0, 0, 1, 1], [], []>} : vector<8x16xbf16>, vector<16x8xbf16>, vector<8x8xf32> -> vector<8x8xf32>
    %117 = arith.truncf %116 : vector<8x8xf32> to vector<8x8xbf16>
    %118 = vector.extract_strided_slice %31 {offsets = [24, 0], sizes = [8, 32], strides = [1, 1]} : vector<32x32xbf16> to vector<8x32xbf16>
    %cst_48 = arith.constant dense<0.000000e+00> : vector<8x32xf32>
    %119 = tpu.matmul %117, %118, %cst_48 {dimension_numbers = #tpu.dot_dimension_numbers<[1], [0], [0], [1], [0, 0, 1, 1], [], []>} : vector<8x8xbf16>, vector<8x32xbf16>, vector<8x32xf32> -> vector<8x32xf32>
    %120 = arith.addf %98, %119 : vector<8x32xf32>
    %c0_49 = arith.constant 0 : index
    %c0_50 = arith.constant 0 : index
    %c0_51 = arith.constant 0 : index
    %121 = vector.load %arg4[%c0_49, %c0_50, %c0_51] : memref<1x8x32xf32, #tpu.memory_space<vmem>>, vector<1x8x32xf32>
    %122 = vector.shape_cast %121 : vector<1x8x32xf32> to vector<8x32xf32>
    %123 = arith.addf %122, %120 : vector<8x32xf32>
    %c0_52 = arith.constant 0 : index
    %c0_53 = arith.constant 0 : index
    %124 = vector.load %arg13[%c0_52, %c0_53] : memref<1x32xf32, #tpu.memory_space<vmem>>, vector<1x32xf32>
    %125 = vector.broadcast %124 : vector<1x32xf32> to vector<8x32xf32>
    %126 = arith.addf %123, %125 : vector<8x32xf32>
    %cst_54 = arith.constant dense<0.000000e+00> : vector<8xf32>
    %127 = vector.multi_reduction <add>, %126, %cst_54 [1] : vector<8x32xf32> to vector<8xf32>
    %128 = vector.shape_cast %127 : vector<8xf32> to vector<8x1xf32>
    %cst_55 = arith.constant 3.200000e+01 : f32
    %129 = vector.broadcast %cst_55 : f32 to vector<8x1xf32>
    %130 = arith.divf %128, %129 : vector<8x1xf32>
    %131 = vector.broadcast %130 : vector<8x1xf32> to vector<8x32xf32>
    %132 = arith.subf %126, %131 : vector<8x32xf32>
    %133 = arith.mulf %132, %132 : vector<8x32xf32>
    %cst_56 = arith.constant dense<0.000000e+00> : vector<8xf32>
    %134 = vector.multi_reduction <add>, %133, %cst_56 [1] : vector<8x32xf32> to vector<8xf32>
    %135 = vector.shape_cast %134 : vector<8xf32> to vector<8x1xf32>
    %cst_57 = arith.constant 3.200000e+01 : f32
    %136 = vector.broadcast %cst_57 : f32 to vector<8x1xf32>
    %137 = arith.divf %135, %136 : vector<8x1xf32>
    %138 = vector.broadcast %130 : vector<8x1xf32> to vector<8x32xf32>
    %139 = arith.subf %126, %138 : vector<8x32xf32>
    %cst_58 = arith.constant 9.99999974E-6 : f32
    %140 = vector.broadcast %cst_58 : f32 to vector<8x1xf32>
    %141 = arith.addf %137, %140 : vector<8x1xf32>
    %142 = math.rsqrt %141 : vector<8x1xf32>
    %143 = vector.broadcast %142 : vector<8x1xf32> to vector<8x32xf32>
    %144 = arith.mulf %139, %143 : vector<8x32xf32>
    %c0_59 = arith.constant 0 : index
    %c0_60 = arith.constant 0 : index
    %145 = vector.load %arg14[%c0_59, %c0_60] : memref<1x32xf32, #tpu.memory_space<vmem>>, vector<1x32xf32>
    %146 = vector.broadcast %145 : vector<1x32xf32> to vector<8x32xf32>
    %147 = arith.mulf %144, %146 : vector<8x32xf32>
    %c0_61 = arith.constant 0 : index
    %c0_62 = arith.constant 0 : index
    %148 = vector.load %arg15[%c0_61, %c0_62] : memref<1x32xf32, #tpu.memory_space<vmem>>, vector<1x32xf32>
    %149 = vector.broadcast %148 : vector<1x32xf32> to vector<8x32xf32>
    %150 = arith.addf %147, %149 : vector<8x32xf32>
    %c0_63 = arith.constant 0 : index
    %c0_64 = arith.constant 0 : index
    %c0_65 = arith.constant 0 : index
    %151 = vector.load %arg16[%c0_63, %c0_64, %c0_65] : memref<1x8x32xf32, #tpu.memory_space<vmem>>, vector<1x8x32xf32>
    %152 = vector.shape_cast %151 : vector<1x8x32xf32> to vector<8x32xf32>
    %153 = vector.shape_cast %150 : vector<8x32xf32> to vector<1x8x32xf32>
    tpu.vector_store %arg16[%c0_63, %c0_64, %c0_65], %153 {strides = array<i32>} : memref<1x8x32xf32, #tpu.memory_space<vmem>>, vector<1x8x32xf32>,
    return
  }
  func.func @transform_0(%arg0: i32) -> (i32, i32, i32) {
    %c0_i32 = arith.constant 0 : i32
    %c0_i32_0 = arith.constant 0 : i32
    %c0_i32_1 = arith.constant 0 : i32
    return %arg0, %c0_i32, %c0_i32_0 : i32, i32, i32
  }
  func.func @transform_1(%arg0: i32) -> (i32, i32, i32) {
    %c0_i32 = arith.constant 0 : i32
    %c0_i32_0 = arith.constant 0 : i32
    %c0_i32_1 = arith.constant 0 : i32
    return %arg0, %c0_i32, %c0_i32_0 : i32, i32, i32
  }
  func.func @transform_2(%arg0: i32) -> (i32, i32, i32) {
    %c0_i32 = arith.constant 0 : i32
    %c0_i32_0 = arith.constant 0 : i32
    %c0_i32_1 = arith.constant 0 : i32
    return %arg0, %c0_i32, %c0_i32_0 : i32, i32, i32
  }
  func.func @transform_3(%arg0: i32) -> (i32, i32, i32) {
    %c0_i32 = arith.constant 0 : i32
    %c0_i32_0 = arith.constant 0 : i32
    %c0_i32_1 = arith.constant 0 : i32
    return %arg0, %c0_i32, %c0_i32_0 : i32, i32, i32
  }
  func.func @transform_4(%arg0: i32) -> (i32, i32, i32) {
    %c0_i32 = arith.constant 0 : i32
    %c0_i32_0 = arith.constant 0 : i32
    %c0_i32_1 = arith.constant 0 : i32
    return %arg0, %c0_i32, %c0_i32_0 : i32, i32, i32
  }
  func.func @transform_5(%arg0: i32) -> (i32, i32) {
    %c0_i32 = arith.constant 0 : i32
    %c0_i32_0 = arith.constant 0 : i32
    %c0_i32_1 = arith.constant 0 : i32
    return %c0_i32, %c0_i32_0 : i32, i32
  }
  func.func @transform_6(%arg0: i32) -> (i32, i32) {
    %c0_i32 = arith.constant 0 : i32
    %c0_i32_0 = arith.constant 0 : i32
    %c0_i32_1 = arith.constant 0 : i32
    return %c0_i32, %c0_i32_0 : i32, i32
  }
  func.func @transform_7(%arg0: i32) -> (i32, i32) {
    %c0_i32 = arith.constant 0 : i32
    %c0_i32_0 = arith.constant 0 : i32
    %c0_i32_1 = arith.constant 0 : i32
    return %c0_i32, %c0_i32_0 : i32, i32
  }
  func.func @transform_8(%arg0: i32) -> (i32, i32) {
    %c0_i32 = arith.constant 0 : i32
    %c0_i32_0 = arith.constant 0 : i32
    %c0_i32_1 = arith.constant 0 : i32
    return %c0_i32, %c0_i32_0 : i32, i32
  }
  func.func @transform_9(%arg0: i32) -> (i32, i32) {
    %c0_i32 = arith.constant 0 : i32
    %c0_i32_0 = arith.constant 0 : i32
    %c0_i32_1 = arith.constant 0 : i32
    return %c0_i32, %c0_i32_0 : i32, i32
  }
  func.func @transform_10(%arg0: i32) -> (i32, i32) {
    %c0_i32 = arith.constant 0 : i32
    %c0_i32_0 = arith.constant 0 : i32
    %c0_i32_1 = arith.constant 0 : i32
    return %c0_i32, %c0_i32_0 : i32, i32
  }
  func.func @transform_11(%arg0: i32) -> (i32, i32) {
    %c0_i32 = arith.constant 0 : i32
    %c0_i32_0 = arith.constant 0 : i32
    %c0_i32_1 = arith.constant 0 : i32
    return %c0_i32, %c0_i32_0 : i32, i32
  }
  func.func @transform_12(%arg0: i32) -> (i32, i32) {
    %c0_i32 = arith.constant 0 : i32
    %c0_i32_0 = arith.constant 0 : i32
    %c0_i32_1 = arith.constant 0 : i32
    return %c0_i32, %c0_i32_0 : i32, i32
  }
  func.func @transform_13(%arg0: i32) -> (i32, i32) {
    %c0_i32 = arith.constant 0 : i32
    %c0_i32_0 = arith.constant 0 : i32
    %c0_i32_1 = arith.constant 0 : i32
    return %c0_i32, %c0_i32_0 : i32, i32
  }
  func.func @transform_14(%arg0: i32) -> (i32, i32) {
    %c0_i32 = arith.constant 0 : i32
    %c0_i32_0 = arith.constant 0 : i32
    %c0_i32_1 = arith.constant 0 : i32
    return %c0_i32, %c0_i32_0 : i32, i32
  }
  func.func @transform_15(%arg0: i32) -> (i32, i32, i32) {
    %c0_i32 = arith.constant 0 : i32
    %c0_i32_0 = arith.constant 0 : i32
    %c0_i32_1 = arith.constant 0 : i32
    return %arg0, %c0_i32, %c0_i32_0 : i32, i32, i32
  }
}

</mosaic_0001>

<bundles_post_ra>
// kernel: decoder_layer_forward.5
= control target key start
LH: loop header
LB: loop body
LE: loop exit
PB: predicated region body
PF: predicated region fallthrough
CT: control target
= control target key end

     0   :  { %vm50_vm0 = vcmask 261120   ;;  %vm107_vm1 = vcmask 523264   ;;  %v239_v26 = vmov 32.0   ;;  %s329_s1 = inlined_call_operand.vmem [shape: bf16[32,64], index: 1, kind: input, shape index: {}]   ;;  %s330_s0 = inlined_call_operand.vmem [shape: f32[16,32], index: 0, kind: input, shape index: {}]   ;;  %s331_s2 = inlined_call_operand.vmem [shape: f32[1,64], index: 2, kind: input, shape index: {}]   ;;  %s332_s4 = inlined_call_operand.vmem [shape: f32[1,32], index: 4, kind: input, shape index: {}]   ;;  %s333_s3 = inlined_call_operand.vmem [shape: bf16[64,32], index: 3, kind: input, shape index: {}]   ;;  %s334_s5 = inlined_call_operand.vmem [shape: f32[1,32], index: 5, kind: input, shape index: {}]   ;;  %s335_s6 = inlined_call_operand.vmem [shape: f32[1,32], index: 6, kind: input, shape index: {}]   ;;  %s336_s7 = inlined_call_operand.vmem [shape: f32[16,32], index: 7, kind: output, shape index: {}]  }
   0x1   :  { %v223_v0 = vld [vmem:[%s329_s1 + $0x8] sm:$0xff]  ;;  %v222_v1 = vld [vmem:[%s329_s1] sm:$0xff]  ;;  %v227_v5 = vld [vmem:[%s333_s3 + $0x18] sm:$0xff]  ;;  %233 = vrcp.f32 %v239_v26 }
   0x2   :  { %60 = vmatpush.bf16.msra.mxu0 %v223_v0  ;;  %v27_v2 = vld [vmem:[%s330_s0] sm:$0xff]  ;;  %v28_v3 = vld [vmem:[%s330_s0 + $0x8] sm:$0xff]  ;;  %115 = vmatpush.bf16.msra.mxu1 %v227_v5  ;;  %v226_v6 = vld [vmem:[%s333_s3 + $0x10] sm:$0xff] }
   0x3   :  { %v29_v4 = vpack.c.bf16 %v28_v3, %v27_v2  ;;  %v225_v7 = vld [vmem:[%s333_s3 + $0x8] sm:$0xff]  ;;  %v224_v8 = vld [vmem:[%s333_s3] sm:$0xff] }
   0x4   :  { %v229_v10 = vld [vmem:[%s331_s2] ss:$0 sm:$0xff] }
   0x5   :  { %v230_v17 = vld [vmem:[%s332_s4] ss:$0 sm:$0xff] }
   0x6   :  { %61 = vmatpush.bf16.msra.mxu0 %v222_v1  ;;  %116 = vmatpush.bf16.msra.mxu1 %v226_v6  ;;  %v231_v57 = vld [vmem:[%s334_s5] ss:$0 sm:$0xff] }
   0x7   :  { %v234_v27 = vpop.eup %233  ;;  %v232_v60 = vld [vmem:[%s335_s6] ss:$0 sm:$0xff] }
   0x8   :  { %v134_v28 = vmul.f32 32.0, %v234_v27  ;;  %vm138_vm2 = vweird.f32 %v234_v27 }
   0x9   :  { %204 = vmatmul.msk.bf16.vlgmr.msra.gmra.mxu0 %vm50_vm0, %v29_v4 }
   0xa   :  { %117 = vmatpush.bf16.msra.mxu1 %v225_v7  ;;  %v135_v29 = vsub.f32 1.0, %v134_v28 }
   0xc   :  { %v136_v30 = vmul.f32 %v234_v27, %v135_v29 }
   0xe   :  { %118 = vmatpush.bf16.msra.mxu1 %v224_v8  ;;  %v137_v31 = vadd.f32 %v234_v27, %v136_v30 }
  0x10   :  { %v139_v32 = vsel %vm138_vm2, %v234_v27, %v137_v31 }
  0x86   :  { %v63_v9 = vpop.f32.mrf.mxu0 }
  0x87   :  { %v64_v11 = vadd.f32 %v229_v10, %v63_v9 }
  0x89   :  { %v68_v14 = vmax.f32 %v64_v11, 0.0 }
  0x8e   :  { %v65_v12 = vpop.f32.mrf.mxu0 }
  0x8f   :  { %v66_v13 = vadd.f32 %v229_v10, %v65_v12 }
  0x91   :  { %v69_v15 = vmax.f32 %v66_v13, 0.0 }
  0x93   :  { %v70_v16 = vpack.c.bf16 %v69_v15, %v68_v14 }
  0x95   :  { %221 = vmatmul.msk.bf16.vlgmr.msra.gmra.mxu1 %vm107_vm1, %v70_v16 }
 0x112   :  { %v120_v18 = vpop.f32.mrf.mxu1 }
 0x113   :  { %v121_v19 = vadd.f32 %v230_v17, %v120_v18 }
 0x115   :  { %v125_v20 = vadd.f32 %v121_v19, %v27_v2 }
 0x117   :  { %v127_v21 = vsel %vm50_vm0, %v125_v20, 0.0 }
 0x118   :  { %128 = vadd.xlane.f32.xlu0 %v127_v21 }
 0x11a   :  { %v122_v22 = vpop.f32.mrf.mxu1 }
 0x11b   :  { %v123_v23 = vadd.f32 %v230_v17, %v122_v22 }
 0x11d   :  { %v126_v24 = vadd.f32 %v123_v23, %v28_v3 }
 0x11f   :  { %v130_v25 = vsel %vm50_vm0, %v126_v24, 0.0 }
 0x120   :  { %131 = vadd.xlane.f32.xlu0 %v130_v25 }
 0x18b   :  { %v129_v33 = vpop.xlane.xlu0 %128 }
 0x18c   :  { %v140_v34 = vmul.f32 %v139_v32, %v129_v33 }
 0x18e   :  { %v142_v35 = vsub.f32 %v125_v20, %v140_v34 }
 0x190   :  { %v144_v36 = vmul.f32 %v142_v35, %v142_v35 }
 0x192   :  { %v146_v37 = vsel %vm50_vm0, %v144_v36, 0.0 }
 0x193   :  { %147 = vadd.xlane.f32.xlu1 %v146_v37  ;;  %v132_v38 = vpop.xlane.xlu0 %131 }
 0x194   :  { %v141_v39 = vmul.f32 %v139_v32, %v132_v38 }
 0x196   :  { %v143_v40 = vsub.f32 %v126_v24, %v141_v39 }
 0x198   :  { %v145_v41 = vmul.f32 %v143_v40, %v143_v40 }
 0x19a   :  { %v149_v42 = vsel %vm50_vm0, %v145_v41, 0.0 }
 0x19b   :  { %150 = vadd.xlane.f32.xlu1 %v149_v42 }
 0x206   :  { %v148_v43 = vpop.xlane.xlu1 %147 }
 0x207   :  { %v152_v44 = vmul.f32 %v148_v43, %v139_v32 }
 0x209   :  { %v154_v45 = vadd.f32 1e-05, %v152_v44 }
 0x20b   :  { %235 = vrsqrt.f32 %v154_v45  ;;  %vm162_vm4 = vweird.f32 %v154_v45 }
 0x20e   :  { %v151_v46 = vpop.xlane.xlu1 %150 }
 0x20f   :  { %v153_v47 = vmul.f32 %v151_v46, %v139_v32 }
 0x211   :  { %v236_v48 = vpop.eup %235  ;;  %v155_v49 = vadd.f32 1e-05, %v153_v47 }
 0x212   :  { %v157_v50 = vmul.f32 %v236_v48, %v154_v45  ;;  %vm163_vm3 = vweird.f32 %v236_v48 }
 0x213   :  { %237 = vrsqrt.f32 %v155_v49  ;;  %vm164_vm5 = vmor %vm162_vm4, %vm163_vm3  ;;  %vm172_vm7 = vweird.f32 %v155_v49 }
 0x214   :  { %v158_v51 = vmul.f32 %v236_v48, %v157_v50 }
 0x216   :  { %v159_v52 = vmul.f32 0.5, %v158_v51 }
 0x218   :  { %v160_v53 = vsub.f32 1.5, %v159_v52 }
 0x219   :  { %v238_v54 = vpop.eup %237 }
 0x21a   :  { %v161_v55 = vmul.f32 %v236_v48, %v160_v53  ;;  %v167_v56 = vmul.f32 %v238_v54, %v155_v49  ;;  %vm173_vm6 = vweird.f32 %v238_v54 }
 0x21b   :  { %vm174_vm8 = vmor %vm172_vm7, %vm173_vm6 }
 0x21c   :  { %v165_v58 = vsel %vm164_vm5, %v236_v48, %v161_v55  ;;  %v168_v59 = vmul.f32 %v238_v54, %v167_v56 }
 0x21d   :  { %v176_v61 = vmul.f32 %v165_v58, %v142_v35 }
 0x21e   :  { %v169_v62 = vmul.f32 0.5, %v168_v59 }
 0x21f   :  { %v182_v63 = vmul.f32 %v231_v57, %v176_v61 }
 0x220   :  { %v170_v0 = vsub.f32 1.5, %v169_v62 }
 0x221   :  { %v188_v1 = vadd.f32 %v232_v60, %v182_v63 }
 0x222   :  { %v171_v2 = vmul.f32 %v238_v54, %v170_v0 }
 0x223   :  { %190 = vst.msk [vmem:[%s336_s7] sm:$0xff] %vm50_vm0, %v188_v1 }
 0x224   :  { %v175_v3 = vsel %vm174_vm8, %v238_v54, %v171_v2 }
 0x225   :  { %v177_v4 = vmul.f32 %v175_v3, %v143_v40 }
 0x227   :  { %v183_v5 = vmul.f32 %v231_v57, %v177_v4 }
 0x229   :  { %v189_v6 = vadd.f32 %v232_v60, %v183_v5 }
 0x22b   :  { %191 = vst.msk [vmem:[%s336_s7 + $0x8] sm:$0xff] %vm50_vm0, %v189_v6 }

// kernel: decoder_layer_forward.4
= control target key start
LH: loop header
LB: loop body
LE: loop exit
PB: predicated region body
PF: predicated region fallthrough
CT: control target
= control target key end

     0   :  { %s1340_s18 = smov 0   ;;  %s1486_s0 = inlined_call_operand.vmem [shape: f32[2,8,32], index: 0, kind: input, shape index: {}]   ;;  %s1487_s1 = inlined_call_operand.vmem [shape: f32[2,16,32], index: 1, kind: input, shape index: {}]   ;;  %s1488_s2 = inlined_call_operand.vmem [shape: f32[2,16,32], index: 2, kind: input, shape index: {}]   ;;  %s1489_s3 = inlined_call_operand.vmem [shape: f32[2,8,32], index: 3, kind: input, shape index: {}]   ;;  %s1490_s4 = inlined_call_operand.vmem [shape: f32[2,1,16], index: 4, kind: input, shape index: {}]   ;;  %s1491_s5 = inlined_call_operand.vmem [shape: bf16[32,32], index: 5, kind: input, shape index: {}]   ;;  %s1492_s6 = inlined_call_operand.vmem [shape: bf16[32,32], index: 6, kind: input, shape index: {}]   ;;  %s1493_s7 = inlined_call_operand.vmem [shape: bf16[32,32], index: 7, kind: input, shape index: {}]   ;;  %s1494_s8 = inlined_call_operand.vmem [shape: f32[1,32], index: 8, kind: input, shape index: {}]   ;;  %s1495_s9 = inlined_call_operand.vmem [shape: f32[1,32], index: 9, kind: input, shape index: {}]   ;;  %s1496_s10 = inlined_call_operand.vmem [shape: f32[1,32], index: 10, kind: input, shape index: {}]   ;;  %s1497_s11 = inlined_call_operand.vmem [shape: bf16[32,32], index: 11, kind: input, shape index: {}]   ;;  %s1498_s12 = inlined_call_operand.vmem [shape: f32[1,32], index: 12, kind: input, shape index: {}]   ;;  %s1499_s13 = inlined_call_operand.vmem [shape: f32[1,32], index: 13, kind: input, shape index: {}]   ;;  %s1500_s14 = inlined_call_operand.vmem [shape: f32[1,32], index: 14, kind: input, shape index: {}]   ;;  %s1501_s15 = inlined_call_operand.vmem [shape: f32[2,8,32], index: 15, kind: output, shape index: {}]  }
   0x1 LB: > { %s1148_s19 = sadd.s32 4294967295, %s1254_s18   ;;  %p1152_p0 = scmp.ge.s32.totalorder %s1254_s18, 1  ;;  %s1254_s18 = sphi %s1340_s18, %s25_s18  }
   0x2   : > { %p473_p1 = scmp.lt.s32.totalorder %s1254_s18, 3 }
   0x4   : > { %p474_p2 = pnand %p1152_p0, %p473_p1 }
   0x5   : > { %p536_p3 = scmp.lt.s32.totalorder (!%p474_p2), %s1148_s19, 1  ;;  %s1256_s27 = smov (!%p474_p2), 112  }
   0x6   : > { %477 = sbr.rel (%p474_p2) target bundleno = 1638 (0x666), region = 80  ;;  %s1257_s30 = smov (!%p474_p2), 120  }
   0x7   : > { %s1258_s21 = smov (!%p474_p2), 104  }
   0xb   : > { %v1206_v0 = vld [vmem:[%s1492_s6 + $0x8] sm:$0xff]  ;;  %v1205_v2 = vld [vmem:[%s1492_s6] sm:$0xff]  ;;  %s1503_s19 = smov (!%p536_p3, %s1148_s19), 1  ;;  %vm590_vm0 = vcmask 261120   ;;  %vm700_vm1 = vcmask 64512   ;;  %vm720_vm2 = vcmask 130048  }
   0xc   : > { %v1204_v1 = vld [vmem:[%s1491_s5 + $0x8] sm:$0xff]  ;;  %636 = vmatpush.bf16.msra.mxu1 %v1206_v0  ;;  %v1203_v3 = vld [vmem:[%s1491_s5] sm:$0xff]  ;;  %s1201_s28 = sshll.u32 %s1503_s19, 4  ;;  %s1364_s29 = sshll.u32 %s1503_s19, 3  ;;  %vm817_vm3 = vcmask 1043456  }
   0xd   : > { %600 = vmatpush.bf16.msra.mxu0 %v1204_v1  ;;  %s544_s17 = scalar_lea.vmem %s1487_s1, %s1201_s28  ;;  %s539_s22 = scalar_lea.vmem %s1486_s0, %s1364_s29  ;;  %v1221_v11 = vld [vmem:[%s1495_s9] ss:$0 sm:$0xff]  ;;  %v1208_v31 = vld [vmem:[%s1493_s7 + $0x8] sm:$0xff] }
   0xe   : > { %v564_v4 = vld [vmem:[%s544_s17] sm:$0xff]  ;;  %v565_v5 = vld [vmem:[%s544_s17 + $0x8] sm:$0xff]  ;;  %s556_s20 = scalar_lea.vmem %s1490_s4, %s1503_s19  ;;  %s549_s24 = scalar_lea.vmem %s1488_s2, %s1201_s28  ;;  %673 = vmatpush.bf16.msra.mxu2 %v1208_v31 }
   0xf   : > { %v562_v6 = vld [vmem:[%s539_s22] sm:$0xff]  ;;  %v566_v7 = vpack.c.bf16 %v565_v5, %v564_v4  ;;  %v568_v35 = vld [vmem:[%s549_s24 + $0x8] sm:$0xff]  ;;  %s553_s17 = scalar_lea.vmem %s1489_s3, %s1364_s29 }
  0x10   : > { %637 = vmatpush.bf16.msra.mxu1 %v1205_v2  ;;  %v563_v8 = vpack.c.bf16 %v562_v6, %v562_v6  ;;  %v1222_v12 = vld [vmem:[%s1494_s8] ss:$0 sm:$0xff] }
  0x11   : > { %601 = vmatpush.bf16.msra.mxu0 %v1203_v3  ;;  %v1207_v33 = vld [vmem:[%s1493_s7] sm:$0xff] }
  0x12   : > { %v567_v34 = vld [vmem:[%s549_s24] sm:$0xff]  ;;  %674 = vmatpush.bf16.msra.mxu2 %v1207_v33 }
  0x13   : > { %1177 = vmatmul.msk.bf16.vlgmr.msra.gmra.mxu1 %vm590_vm0, %v566_v7  ;;  %v569_v36 = vpack.c.bf16 %v568_v35, %v567_v34  ;;  %v1409_v38 = vld [vmem:[%s556_s20] ss:$0 sm:$0xff] }
  0x14   : > { %1168 = vmatmul.msk.bf16.vlgmr.msra.gmra.mxu0 %vm590_vm0, %v563_v8  ;;  %v1224_v58 = vld [vmem:[%s1496_s10] ss:$0 sm:$0xff] }
  0x15   : > { %1186 = vmatmul.msk.bf16.vlgmr.msra.gmra.mxu2 %vm590_vm0, %v569_v36  ;;  %v688_v6 = vld [vmem:[%s1497_s11] sm:$0xf] }
  0x16   : > { %v838_v7 = vsel %vm817_vm3, %v688_v6, 0 }
  0x90   : > { %v639_v9 = vpop.f32.mrf.mxu1 }
  0x91   : > { %v603_v10 = vpop.f32.mrf.mxu0  ;;  %v640_v13 = vadd.f32 %v1221_v11, %v639_v9 }
  0x92   : > { %v604_v14 = vadd.f32 %v1222_v12, %v603_v10 }
  0x93   : > { %v683_v17 = vpack.c.bf16 %v640_v13, %v640_v13 }
  0x94   : > { %v681_v19 = vmul.f32 0.35355338, %v604_v14 }
  0x95   : > { %v697_v21 = vunpack.c.l.b16 %v683_v17 }
  0x96   : > { %v682_v23 = vpack.c.bf16 %v681_v19, %v681_v19 }
  0x98   : > { %v641_v15 = vpop.f32.mrf.mxu1  ;;  %v757_v25 = vunpack.c.l.b16 %v682_v23  ;;  %v676_v57 = vpop.f32.mrf.mxu2 }
  0x99   : > { %v605_v16 = vpop.f32.mrf.mxu0  ;;  %v642_v18 = vadd.f32 %v1221_v11, %v641_v15  ;;  %v677_v59 = vadd.f32 %v1224_v58, %v676_v57 }
  0x9a   : > { %v758_v27 = vpack.c.b16 %v757_v25, %v757_v25 }
  0x9b   : > { %v684_v20 = vpack.c.bf16 %v642_v18, %v642_v18  ;;  %v685_v60 = vpack.c.bf16 %v677_v59, %v677_v59 }
  0x9d   : > { %v698_v22 = vunpack.c.l.b16 %v684_v20  ;;  %v735_v63 = vunpack.c.l.b16 %v685_v60 }
  0x9f   : > { %v699_v24 = vpack.c.b16 %v698_v22, %v697_v21 }
  0xa0   : > { %v678_v61 = vpop.f32.mrf.mxu2 }
  0xa1   : > { %855 = vrot.lane.b32.xlu2 %v699_v24, %s1256_s27  ;;  %761 = vrot.lane.b32.xlu1 %v699_v24, %s1257_s30  ;;  %v705_v26 = vsel %vm700_vm1, %v699_v24, 0  ;;  %v679_v62 = vadd.f32 %v1224_v58, %v678_v61 }
  0xa2   : > { %714 = vmatpush.bf16.xpose.msra.mxu3 %v705_v26 }
  0xa3   : > { %v686_v0 = vpack.c.bf16 %v679_v62, %v679_v62 }
  0xa5   : > { %v736_v1 = vunpack.c.l.b16 %v686_v0 }
  0xa7   : > { %v1423_v2 = vpack.c.b16 %v736_v1, %v735_v63  ;;  %v691_v63 = vld [vmem:[%s1497_s11 + $0xc] sm:$0xf] }
  0xa8   : > { %v987_v0 = vsel %vm817_vm3, %v691_v63, 0 }
  0xa9   : > { %759 = vrot.lane.b32.xlu1 %v758_v27, %s1257_s30  ;;  %1187 = vmatmul.msk.bf16.vlgmr.msra.gmra.mxu3 %vm700_vm1, %v682_v23 }
  0xaa   : > { %853 = vrot.lane.b32.xlu2 %v758_v27, %s1256_s27  ;;  %749 = vmatpush.bf16.msrb.mxu0 %v1423_v2 }
  0xae   : > { %847 = vmatpush.bf16.msra.mxu0 %v838_v7 }
  0xb1   : > { %928 = vrot.lane.b32.xlu1 %v758_v27, %s1258_s21 }
  0xfb   : > { %v856_v28 = vpop.permute.xlu2 %855 }
  0xfc   : > { %v861_v32 = vsel %vm700_vm1, %v856_v28, 0 }
 0x104   : > { %v854_v39 = vpop.permute.xlu2 %853 }
 0x113   : > { %v762_v29 = vpop.permute.xlu1 %761 }
 0x114   : > { %v767_v30 = vsel %vm700_vm1, %v762_v29, 0 }
 0x115   : > { %776 = vmatpush.bf16.xpose.msrb.mxu1 %v767_v30  ;;  %v689_v30 = vld [vmem:[%s1497_s11 + $0x4] sm:$0xf] }
 0x116   : > { %v819_v31 = vsel %vm817_vm3, %v689_v30, 0 }
 0x117   : > { %828 = vmatpush.bf16.msrb.mxu3 %v819_v31 }
 0x11b   : > { %v760_v37 = vpop.permute.xlu1 %759 }
 0x11c   : > { %1189 = vmatmul.msk.bf16.vlgmr.msrb.gmra.mxu1 %vm700_vm1, %v760_v37 }
 0x11d   : > { %870 = vmatpush.bf16.xpose.msra.mxu1 %v861_v32 }
 0x123   : > { %v929_v8 = vpop.permute.xlu1 %928 }
 0x12c   : > { %v716_v40 = vpop.f32.mrf.mxu3  ;;  %1193 = vmatmul.msk.bf16.vlgmr.msra.gmra.mxu1 %vm700_vm1, %v854_v39 }
 0x12d   : > { %v717_v41 = vadd.f32 %v1409_v38, %v716_v40 }
 0x12f   : > { %v721_v42 = vsel %vm720_vm2, %v717_v41, -inf }
 0x130   : > { %722 = vmax.xlane.f32.xlu0 %v721_v42 }
 0x134   : > { %v718_v43 = vpop.f32.mrf.mxu3 }
 0x199   : > { %v778_v44 = vpop.f32.mrf.mxu1 }
 0x19a   : > { %v779_v45 = vadd.f32 %v1409_v38, %v778_v44 }
 0x19c   : > { %v782_v46 = vsel %vm720_vm2, %v779_v45, -inf }
 0x19d   : > { %783 = vmax.xlane.f32.xlu2 %v782_v46 }
 0x1a1   : > { %v780_v47 = vpop.f32.mrf.mxu1 }
 0x1a3   : > { %v723_v48 = vpop.xlane.xlu0 %722 }
 0x1a4   : > { %v724_v49 = vsub.f32 %v717_v41, %v723_v48 }
 0x1a6   : > { %v725_v50 = vmul.f32 1.442695, %v724_v49 }
 0x1a8   : > { %1228 = vpow2.f32 %v725_v50 }
 0x1a9   : > { %v872_v51 = vpop.f32.mrf.mxu1 }
 0x1aa   : > { %v873_v52 = vadd.f32 %v1409_v38, %v872_v51 }
 0x1ac   : > { %v876_v53 = vsel %vm720_vm2, %v873_v52, -inf }
 0x1ad   : > { %877 = vmax.xlane.f32.xlu1 %v876_v53  ;;  %v690_v53 = vld [vmem:[%s1497_s11 + $0x8] sm:$0xf] }
 0x1ae   : > { %v1229_v54 = vpop.eup %1228 }
 0x1af   : > { %v727_v55 = vsel %vm720_vm2, %v1229_v54, 0.0 }
 0x1b0   : > { %728 = vadd.xlane.f32.xlu0 %v727_v55 }
 0x1b1   : > { %v874_v56 = vpop.f32.mrf.mxu1 }
 0x1c4   : > { %930 = vrot.lane.b32.xlu0 %v699_v24, %s1258_s21 }
 0x210   : > { %v784_v3 = vpop.xlane.xlu2 %783 }
 0x211   : > { %v785_v4 = vsub.f32 %v779_v45, %v784_v3 }
 0x213   : > { %v786_v5 = vmul.f32 1.442695, %v785_v4 }
 0x215   : > { %1230 = vpow2.f32 %v786_v5 }
 0x21b   : > { %v1231_v9 = vpop.eup %1230 }
 0x21c   : > { %v788_v10 = vsel %vm720_vm2, %v1231_v9, 0.0 }
 0x21d   : > { %789 = vadd.xlane.f32.xlu2 %v788_v10 }
 0x220   : > { %v878_v11 = vpop.xlane.xlu1 %877 }
 0x221   : > { %v879_v12 = vsub.f32 %v873_v52, %v878_v11  ;;  %v1225_v11 = vld [vmem:[%s1498_s12] ss:$0 sm:$0xff] }
 0x223   : > { %v880_v13 = vmul.f32 1.442695, %v879_v12  ;;  %v729_v14 = vpop.xlane.xlu0 %728 }
 0x224   : > { %1232 = vrcp.f32 %v729_v14 }
 0x225   : > { %1234 = vpow2.f32 %v880_v13 }
 0x22a   : > { %v1233_v15 = vpop.eup %1232 }
 0x22b   : > { %v1235_v16 = vpop.eup %1234  ;;  %v731_v17 = vmul.f32 %v1233_v15, %v1229_v54  ;;  %v912_v54 = vsel %vm817_vm3, %v690_v53, 0 }
 0x22c   : > { %v882_v18 = vsel %vm720_vm2, %v1235_v16, 0.0  ;;  %921 = vmatpush.bf16.msra.mxu3 %v912_v54 }
 0x22d   : > { %883 = vadd.xlane.f32.xlu1 %v882_v18  ;;  %v732_v19 = vpack.c.bf16 %v731_v17, %v731_v17 }
 0x22f   : > { %1188 = vmatmul.msk.bf16.vlgmr.msrb.gmra.mxu0 %vm720_vm2, %v732_v19 }
 0x235   : > { %794 = vrot.lane.b32.xlu2 %v1423_v2, %s1257_s30 }
 0x236   : > { %v931_v20 = vpop.permute.xlu0 %930 }
 0x237   : > { %v936_v21 = vsel %vm700_vm1, %v931_v20, 0 }
 0x238   : > { %945 = vmatpush.bf16.xpose.msrb.mxu0 %v936_v21 }
 0x290   : > { %v790_v22 = vpop.xlane.xlu2 %789 }
 0x291   : > { %1236 = vrcp.f32 %v790_v22 }
 0x297   : > { %v1237_v23 = vpop.eup %1236 }
 0x298   : > { %v792_v24 = vmul.f32 %v1237_v23, %v1231_v9  ;;  %v795_v25 = vpop.permute.xlu2 %794  ;;  %v1003_v9 = vld [vmem:[%s553_s17] sm:$0xff] }
 0x299   : > { %807 = vmatpush.bf16.msrb.mxu2 %v795_v25 }
 0x29a   : > { %v793_v26 = vpack.c.bf16 %v792_v24, %v792_v24 }
 0x29c   : > { %1190 = vmatmul.msk.bf16.vlgmr.msrb.gmra.mxu2 %vm720_vm2, %v793_v26 }
 0x2a0   : > { %v884_v47 = vpop.xlane.xlu1 %883 }
 0x2ac   : > { %v751_v27 = vpop.f32.mrf.mxu0 }
 0x2ad   : > { %v755_v28 = vpack.c.bf16 %v751_v27, %v751_v27 }
 0x2af   : > { %1192 = vmatmul.msk.bf16.vlgmr.msra.gmra.mxu0 %vm700_vm1, %v755_v28 }
 0x2b4   : > { %v753_v29 = vpop.f32.mrf.mxu0 }
 0x2bf   : > { %1196 = vmatmul.msk.bf16.vlgmr.msrb.gmra.mxu0 %vm700_vm1, %v929_v8 }
 0x31f   : > { %v809_v32 = vpop.f32.mrf.mxu2 }
 0x320   : > { %v813_v33 = vpack.c.bf16 %v809_v32, %v809_v32 }
 0x322   : > { %1191 = vmatmul.msk.bf16.vlgmr.msrb.gmra.mxu3 %vm700_vm1, %v813_v33 }
 0x327   : > { %v811_v34 = vpop.f32.mrf.mxu2 }
 0x32c   : > { %v849_v35 = vpop.f32.mrf.mxu0 }
 0x334   : > { %v851_v36 = vpop.f32.mrf.mxu0 }
 0x33c   : > { %v947_v37 = vpop.f32.mrf.mxu0 }
 0x33d   : > { %v948_v39 = vadd.f32 %v1409_v38, %v947_v37  ;;  %v1226_v37 = vld [vmem:[%s1499_s13] ss:$0 sm:$0xff] }
 0x33f   : > { %v951_v40 = vsel %vm720_vm2, %v948_v39, -inf }
 0x340   : > { %952 = vmax.xlane.f32.xlu0 %v951_v40  ;;  %v1227_v40 = vld [vmem:[%s1500_s14] ss:$0 sm:$0xff] }
 0x344   : > { %v949_v41 = vpop.f32.mrf.mxu0 }
 0x354   : > { %888 = vrot.lane.b32.xlu0 %v1423_v2, %s1256_s27 }
 0x3a5   : > { %v830_v42 = vpop.f32.mrf.mxu3 }
 0x3a6   : > { %v850_v3 = vadd.f32 %v849_v35, %v830_v42 }
 0x3ad   : > { %v832_v43 = vpop.f32.mrf.mxu3 }
 0x3b3   : > { %v953_v44 = vpop.xlane.xlu0 %952 }
 0x3b4   : > { %v954_v45 = vsub.f32 %v948_v39, %v953_v44 }
 0x3b6   : > { %v955_v46 = vmul.f32 1.442695, %v954_v45 }
 0x3b8   : > { %1238 = vpow2.f32 %v955_v46 }
 0x3b9   : > { %1240 = vrcp.f32 %v884_v47 }
 0x3be   : > { %v1239_v48 = vpop.eup %1238 }
 0x3bf   : > { %v957_v49 = vsel %vm720_vm2, %v1239_v48, 0.0  ;;  %v1241_v38 = vpop.eup %1240 }
 0x3c0   : > { %958 = vadd.xlane.f32.xlu1 %v957_v49  ;;  %v886_v50 = vmul.f32 %v1241_v38, %v1235_v16  ;;  %v1259_v16 = vmov 32.0  }
 0x3c2   : > { %v887_v52 = vpack.c.bf16 %v886_v50, %v886_v50 }
 0x3c6   : > { %v889_v51 = vpop.permute.xlu0 %888 }
 0x3c7   : > { %901 = vmatpush.bf16.msra.mxu2 %v889_v51 }
 0x3ca   : > { %1194 = vmatmul.msk.bf16.vlgmr.msra.gmra.mxu2 %vm720_vm2, %v887_v52 }
 0x3cb   : > { %996 = vmatpush.bf16.msrb.mxu2 %v987_v0 }
 0x3d9   : > { %963 = vrot.lane.b32.xlu1 %v1423_v2, %s1258_s21  ;;  %s560_s21 = scalar_lea.vmem %s1501_s15, %s1364_s29 }
 0x433   : > { %v959_v55 = vpop.xlane.xlu1 %958 }
 0x434   : > { %1242 = vrcp.f32 %v959_v55 }
 0x435   : > { %1244 = vrcp.f32 %v1259_v16 }
 0x43a   : > { %v1243_v56 = vpop.eup %1242 }
 0x43b   : > { %v961_v57 = vmul.f32 %v1243_v56, %v1239_v48  ;;  %v1245_v17 = vpop.eup %1244 }
 0x43c   : > { %v1014_v18 = vmul.f32 32.0, %v1245_v17  ;;  %vm1018_vm4 = vweird.f32 %v1245_v17 }
 0x43d   : > { %v962_v59 = vpack.c.bf16 %v961_v57, %v961_v57 }
 0x43e   : > { %v1015_v19 = vsub.f32 1.0, %v1014_v18 }
 0x440   : > { %v1016_v20 = vmul.f32 %v1245_v17, %v1015_v19 }
 0x442   : > { %v1017_v21 = vadd.f32 %v1245_v17, %v1016_v20 }
 0x444   : > { %v1019_v22 = vsel %vm1018_vm4, %v1245_v17, %v1017_v21 }
 0x44b   : > { %v964_v58 = vpop.permute.xlu1 %963 }
 0x44c   : > { %976 = vmatpush.bf16.msrb.mxu1 %v964_v58 }
 0x44d   : > { %v903_v60 = vpop.f32.mrf.mxu2 }
 0x44e   : > { %v907_v61 = vpack.c.bf16 %v903_v60, %v903_v60 }
 0x44f   : > { %1197 = vmatmul.msk.bf16.vlgmr.msrb.gmra.mxu1 %vm720_vm2, %v962_v59 }
 0x450   : > { %1195 = vmatmul.msk.bf16.vlgmr.msra.gmra.mxu3 %vm700_vm1, %v907_v61 }
 0x455   : > { %v905_v62 = vpop.f32.mrf.mxu2 }
 0x4cc   : > { %v978_v1 = vpop.f32.mrf.mxu1 }
 0x4cd   : > { %v982_v2 = vpack.c.bf16 %v978_v1, %v978_v1 }
 0x4cf   : > { %1198 = vmatmul.msk.bf16.vlgmr.msrb.gmra.mxu2 %vm700_vm1, %v982_v2 }
 0x4d3   : > { %v923_v4 = vpop.f32.mrf.mxu3 }
 0x4d4   : > { %v927_v5 = vadd.f32 %v923_v4, %v850_v3  ;;  %v980_v6 = vpop.f32.mrf.mxu1 }
 0x4db   : > { %v925_v7 = vpop.f32.mrf.mxu3 }
 0x552   : > { %v998_v8 = vpop.f32.mrf.mxu2 }
 0x553   : > { %v1002_v10 = vadd.f32 %v998_v8, %v927_v5 }
 0x555   : > { %v1004_v12 = vadd.f32 %v1003_v9, %v1002_v10 }
 0x557   : > { %v1009_v13 = vadd.f32 %v1225_v11, %v1004_v12 }
 0x559   : > { %v1010_v14 = vsel %vm590_vm0, %v1009_v13, 0.0 }
 0x55a   : > { %1011 = vadd.xlane.f32.xlu2 %v1010_v14  ;;  %v1000_v15 = vpop.f32.mrf.mxu2 }
 0x5cd   : > { %v1012_v23 = vpop.xlane.xlu2 %1011 }
 0x5ce   : > { %v1020_v24 = vmul.f32 %v1019_v22, %v1012_v23 }
 0x5d0   : > { %v1021_v25 = vsub.f32 %v1009_v13, %v1020_v24 }
 0x5d2   : > { %v1022_v26 = vmul.f32 %v1021_v25, %v1021_v25 }
 0x5d4   : > { %v1023_v27 = vsel %vm590_vm0, %v1022_v26, 0.0 }
 0x5d5   : > { %1024 = vadd.xlane.f32.xlu0 %v1023_v27 }
 0x648   : > { %v1025_v28 = vpop.xlane.xlu0 %1024 }
 0x649   : > { %v1026_v29 = vmul.f32 %v1025_v28, %v1019_v22 }
 0x64b   : > { %v1027_v30 = vadd.f32 1e-05, %v1026_v29 }
 0x64d   : > { %1246 = vrsqrt.f32 %v1027_v30  ;;  %vm1034_vm6 = vweird.f32 %v1027_v30 }
 0x653   : > { %v1247_v31 = vpop.eup %1246 }
 0x654   : > { %v1029_v32 = vmul.f32 %v1247_v31, %v1027_v30  ;;  %vm1035_vm5 = vweird.f32 %v1247_v31 }
 0x655   : > { %vm1036_vm7 = vmor %vm1034_vm6, %vm1035_vm5 }
 0x656   : > { %v1030_v33 = vmul.f32 %v1247_v31, %v1029_v32 }
 0x658   : > { %v1031_v34 = vmul.f32 0.5, %v1030_v33 }
 0x65a   : > { %v1032_v35 = vsub.f32 1.5, %v1031_v34 }
 0x65c   : > { %v1033_v36 = vmul.f32 %v1247_v31, %v1032_v35 }
 0x65e   : > { %v1037_v39 = vsel %vm1036_vm7, %v1247_v31, %v1033_v36 }
 0x65f   : > { %v1038_v41 = vmul.f32 %v1037_v39, %v1021_v25 }
 0x661   : > { %v1043_v42 = vmul.f32 %v1226_v37, %v1038_v41 }
 0x663   : > { %v1048_v43 = vadd.f32 %v1227_v40, %v1043_v42 }
 0x665   : > { %1049 = vst.msk [vmem:[%s560_s21] sm:$0xff] %vm590_vm0, %v1048_v43 }
 0x666 PF: > { %s25_s18 = sadd.s32 1, %s1254_s18  }
 0x667   : > { %p22_p4 = scmp.ge.s32.totalorder %s25_s18, 4  }
 0x669   :  { %24 = sbr.rel (!%p22_p4) target bundleno = 1 (0x1), region = 122 }

// kernel: decoder_layer_forward.3
= control target key start
LH: loop header
LB: loop body
LE: loop exit
PB: predicated region body
PF: predicated region fallthrough
CT: control target
= control target key end

     0   :  { %s1327_s18 = smov 0   ;;  %s1468_s0 = inlined_call_operand.vmem [shape: f32[2,8,32], index: 0, kind: input, shape index: {}, may-alias: {0,1}]   ;;  %s1469_s1 = inlined_call_operand.vmem [shape: f32[2,8,32], index: 1, kind: input, shape index: {}, may-alias: {0,1}]   ;;  %s1470_s2 = inlined_call_operand.vmem [shape: f32[2,8,32], index: 2, kind: input, shape index: {}, may-alias: {2,3}]   ;;  %s1471_s3 = inlined_call_operand.vmem [shape: f32[2,8,32], index: 3, kind: input, shape index: {}, may-alias: {2,3}]   ;;  %s1472_s4 = inlined_call_operand.vmem [shape: f32[2,1,8], index: 4, kind: input, shape index: {}]   ;;  %s1473_s5 = inlined_call_operand.vmem [shape: bf16[32,32], index: 5, kind: input, shape index: {}]   ;;  %s1474_s6 = inlined_call_operand.vmem [shape: bf16[32,32], index: 6, kind: input, shape index: {}]   ;;  %s1475_s7 = inlined_call_operand.vmem [shape: bf16[32,32], index: 7, kind: input, shape index: {}]   ;;  %s1476_s8 = inlined_call_operand.vmem [shape: f32[1,32], index: 8, kind: input, shape index: {}]   ;;  %s1477_s9 = inlined_call_operand.vmem [shape: f32[1,32], index: 9, kind: input, shape index: {}]   ;;  %s1478_s10 = inlined_call_operand.vmem [shape: f32[1,32], index: 10, kind: input, shape index: {}]   ;;  %s1479_s11 = inlined_call_operand.vmem [shape: bf16[32,32], index: 11, kind: input, shape index: {}]   ;;  %s1480_s12 = inlined_call_operand.vmem [shape: f32[1,32], index: 12, kind: input, shape index: {}]   ;;  %s1481_s13 = inlined_call_operand.vmem [shape: f32[1,32], index: 13, kind: input, shape index: {}]   ;;  %s1482_s14 = inlined_call_operand.vmem [shape: f32[1,32], index: 14, kind: input, shape index: {}]   ;;  %s1483_s15 = inlined_call_operand.vmem [shape: f32[2,8,32], index: 15, kind: output, shape index: {}]  }
   0x1 LB: > { %s1139_s19 = sadd.s32 4294967295, %s1241_s18   ;;  %p1143_p0 = scmp.ge.s32.totalorder %s1241_s18, 1  ;;  %s1241_s18 = sphi %s1327_s18, %s25_s18  }
   0x2   : > { %p471_p1 = scmp.lt.s32.totalorder %s1241_s18, 3 }
   0x4   : > { %p472_p2 = pnand %p1143_p0, %p471_p1 }
   0x5   : > { %p532_p3 = scmp.lt.s32.totalorder (!%p472_p2), %s1139_s19, 1  ;;  %s1243_s26 = smov (!%p472_p2), 112  }
   0x6   : > { %475 = sbr.rel (%p472_p2) target bundleno = 1623 (0x657), region = 80  ;;  %s1244_s27 = smov (!%p472_p2), 120  }
   0x7   : > { %s1245_s17 = smov (!%p472_p2), 104  }
   0xb   : > { %v1191_v0 = vld [vmem:[%s1473_s5 + $0x8] sm:$0xff]  ;;  %v1190_v2 = vld [vmem:[%s1473_s5] sm:$0xff]  ;;  %s1485_s19 = smov (!%p532_p3, %s1139_s19), 1  ;;  %vm582_vm0 = vcmask 261120   ;;  %vm683_vm1 = vcmask 64512   ;;  %vm718_vm2 = vcmask 1043456  }
   0xc   : > { %v1193_v1 = vld [vmem:[%s1474_s6 + $0x8] sm:$0xff]  ;;  %592 = vmatpush.bf16.msra.mxu0 %v1191_v0  ;;  %v1192_v3 = vld [vmem:[%s1474_s6] sm:$0xff]  ;;  %s1350_s28 = sshll.u32 %s1485_s19, 3 }
   0xd   : > { %628 = vmatpush.bf16.msra.mxu1 %v1193_v1  ;;  %s535_s16 = scalar_lea.vmem %s1468_s0, %s1350_s28  ;;  %s539_s21 = scalar_lea.vmem %s1469_s1, %s1350_s28  ;;  %v1208_v8 = vld [vmem:[%s1476_s8] ss:$0 sm:$0xff]  ;;  %v1195_v24 = vld [vmem:[%s1475_s7 + $0x8] sm:$0xff] }
   0xe   : > { %v556_v4 = vld [vmem:[%s535_s16] sm:$0xff]  ;;  %s550_s16 = scalar_lea.vmem %s1472_s4, %s1485_s19  ;;  %s543_s22 = scalar_lea.vmem %s1470_s2, %s1350_s28  ;;  %664 = vmatpush.bf16.msra.mxu2 %v1195_v24 }
   0xf   : > { %v557_v5 = vpack.c.bf16 %v556_v4, %v556_v4  ;;  %v558_v6 = vld [vmem:[%s539_s21] sm:$0xff]  ;;  %s547_s25 = scalar_lea.vmem %s1471_s3, %s1350_s28  ;;  %s554_s23 = scalar_lea.vmem %s1483_s15, %s1350_s28 }
  0x10   : > { %593 = vmatpush.bf16.msra.mxu0 %v1190_v2  ;;  %v559_v7 = vpack.c.bf16 %v558_v6, %v558_v6  ;;  %v1209_v9 = vld [vmem:[%s1477_s9] ss:$0 sm:$0xff] }
  0x11   : > { %629 = vmatpush.bf16.msra.mxu1 %v1192_v3  ;;  %v1194_v26 = vld [vmem:[%s1475_s7] sm:$0xff] }
  0x12   : > { %v560_v27 = vld [vmem:[%s543_s22] sm:$0xff]  ;;  %665 = vmatpush.bf16.msra.mxu2 %v1194_v26 }
  0x13   : > { %1157 = vmatmul.msk.bf16.vlgmr.msra.gmra.mxu0 %vm582_vm0, %v557_v5  ;;  %v561_v31 = vpack.c.bf16 %v560_v27, %v560_v27  ;;  %v1393_v33 = vld [vmem:[%s550_s16] ss:$0 sm:$0xff] }
  0x14   : > { %1166 = vmatmul.msk.bf16.vlgmr.msra.gmra.mxu1 %vm582_vm0, %v559_v7  ;;  %v1211_v53 = vld [vmem:[%s1478_s10] ss:$0 sm:$0xff] }
  0x15   : > { %1175 = vmatmul.msk.bf16.vlgmr.msra.gmra.mxu2 %vm582_vm0, %v561_v31  ;;  %v676_v60 = vld [vmem:[%s1479_s11] sm:$0xf] }
  0x16   : > { %v825_v61 = vsel %vm718_vm2, %v676_v60, 0 }
  0x90   : > { %v595_v10 = vpop.f32.mrf.mxu0 }
  0x91   : > { %v596_v11 = vadd.f32 %v1208_v8, %v595_v10  ;;  %v631_v12 = vpop.f32.mrf.mxu1 }
  0x92   : > { %v632_v13 = vadd.f32 %v1209_v9, %v631_v12 }
  0x93   : > { %v671_v14 = vmul.f32 0.35355338, %v596_v11 }
  0x94   : > { %v673_v15 = vpack.c.bf16 %v632_v13, %v632_v13 }
  0x95   : > { %v672_v16 = vpack.c.bf16 %v671_v14, %v671_v14 }
  0x96   : > { %v742_v17 = vunpack.c.l.b16 %v673_v15  ;;  %v688_v18 = vsel %vm683_vm1, %v673_v15, 0 }
  0x97   : > { %697 = vmatpush.bf16.xpose.msra.mxu3 %v688_v18  ;;  %v737_v22 = vunpack.c.l.b16 %v672_v16 }
  0x98   : > { %v743_v19 = vpack.c.b16 %v742_v17, %v742_v17  ;;  %v597_v20 = vpop.f32.mrf.mxu0  ;;  %v667_v52 = vpop.f32.mrf.mxu2 }
  0x99   : > { %v633_v21 = vpop.f32.mrf.mxu1  ;;  %v738_v23 = vpack.c.b16 %v737_v22, %v737_v22  ;;  %v668_v55 = vadd.f32 %v1211_v53, %v667_v52 }
  0x9a   : > { %842 = vrot.lane.b32.xlu2 %v743_v19, %s1243_s26  ;;  %744 = vrot.lane.b32.xlu1 %v743_v19, %s1244_s27 }
  0x9b   : > { %v674_v56 = vpack.c.bf16 %v668_v55, %v668_v55 }
  0x9d   : > { %v720_v57 = vsel %vm718_vm2, %v674_v56, 0  ;;  %v778_v11 = vunpack.c.l.b16 %v674_v56 }
  0x9e   : > { %1176 = vmatmul.msk.bf16.vlgmr.msra.gmra.mxu3 %vm683_vm1, %v672_v16  ;;  %729 = vmatpush.bf16.msrb.mxu0 %v720_v57 }
  0x9f   : > { %v779_v13 = vpack.c.b16 %v778_v11, %v778_v11 }
  0xa0   : > { %v669_v54 = vpop.f32.mrf.mxu2 }
  0xa2   : > { %840 = vrot.lane.b32.xlu2 %v738_v23, %s1243_s26  ;;  %739 = vrot.lane.b32.xlu1 %v738_v23, %s1244_s27 }
  0xa3   : > { %834 = vmatpush.bf16.msra.mxu0 %v825_v61 }
  0xaa   : > { %917 = vrot.lane.b32.xlu1 %v738_v23, %s1245_s17 }
  0xf4   : > { %v843_v25 = vpop.permute.xlu2 %842 }
  0xf5   : > { %v848_v30 = vsel %vm683_vm1, %v843_v25, 0 }
  0xfc   : > { %v841_v36 = vpop.permute.xlu2 %840 }
 0x10c   : > { %v745_v28 = vpop.permute.xlu1 %744 }
 0x10d   : > { %v750_v29 = vsel %vm683_vm1, %v745_v28, 0 }
 0x10e   : > { %759 = vmatpush.bf16.xpose.msrb.mxu1 %v750_v29 }
 0x114   : > { %v740_v32 = vpop.permute.xlu1 %739 }
 0x115   : > { %1178 = vmatmul.msk.bf16.vlgmr.msrb.gmra.mxu1 %vm683_vm1, %v740_v32  ;;  %v678_v32 = vld [vmem:[%s1479_s11 + $0x8] sm:$0xf] }
 0x116   : > { %857 = vmatpush.bf16.xpose.msra.mxu1 %v848_v30  ;;  %v677_v30 = vld [vmem:[%s1479_s11 + $0x4] sm:$0xf] }
 0x117   : > { %v806_v31 = vsel %vm718_vm2, %v677_v30, 0 }
 0x118   : > { %815 = vmatpush.bf16.msrb.mxu3 %v806_v31 }
 0x11c   : > { %v918_v63 = vpop.permute.xlu1 %917 }
 0x121   : > { %v699_v34 = vpop.f32.mrf.mxu3 }
 0x122   : > { %v700_v35 = vadd.f32 %v1393_v33, %v699_v34  ;;  %v901_v34 = vsel %vm718_vm2, %v678_v32, 0 }
 0x123   : > { %910 = vmatpush.bf16.msra.mxu3 %v901_v34  ;;  %v1213_v34 = vld [vmem:[%s1481_s13] ss:$0 sm:$0xff] }
 0x124   : > { %v703_v37 = vsel %vm683_vm1, %v700_v35, -inf }
 0x125   : > { %1182 = vmatmul.msk.bf16.vlgmr.msra.gmra.mxu1 %vm683_vm1, %v841_v36  ;;  %704 = vmax.xlane.f32.xlu0 %v703_v37 }
 0x129   : > { %v701_v38 = vpop.f32.mrf.mxu3 }
 0x192   : > { %v761_v39 = vpop.f32.mrf.mxu1 }
 0x193   : > { %v762_v40 = vadd.f32 %v1393_v33, %v761_v39 }
 0x195   : > { %v765_v41 = vsel %vm683_vm1, %v762_v40, -inf }
 0x196   : > { %766 = vmax.xlane.f32.xlu2 %v765_v41 }
 0x198   : > { %v705_v42 = vpop.xlane.xlu0 %704 }
 0x199   : > { %v706_v43 = vsub.f32 %v700_v35, %v705_v42 }
 0x19a   : > { %v763_v44 = vpop.f32.mrf.mxu1 }
 0x19b   : > { %v707_v45 = vmul.f32 1.442695, %v706_v43 }
 0x19d   : > { %1215 = vpow2.f32 %v707_v45 }
 0x1a2   : > { %v859_v46 = vpop.f32.mrf.mxu1 }
 0x1a3   : > { %v1216_v47 = vpop.eup %1215  ;;  %v860_v48 = vadd.f32 %v1393_v33, %v859_v46 }
 0x1a4   : > { %v709_v49 = vsel %vm683_vm1, %v1216_v47, 0.0 }
 0x1a5   : > { %710 = vadd.xlane.f32.xlu0 %v709_v49  ;;  %v863_v50 = vsel %vm683_vm1, %v860_v48, -inf }
 0x1a6   : > { %864 = vmax.xlane.f32.xlu1 %v863_v50 }
 0x1aa   : > { %v861_v51 = vpop.f32.mrf.mxu1 }
 0x1b9   : > { %919 = vrot.lane.b32.xlu0 %v743_v19, %s1245_s17 }
 0x209   : > { %v767_v58 = vpop.xlane.xlu2 %766 }
 0x20a   : > { %v768_v59 = vsub.f32 %v762_v40, %v767_v58 }
 0x20c   : > { %v769_v62 = vmul.f32 1.442695, %v768_v59 }
 0x20e   : > { %1217 = vpow2.f32 %v769_v62 }
 0x214   : > { %v1218_v0 = vpop.eup %1217 }
 0x215   : > { %v771_v1 = vsel %vm683_vm1, %v1218_v0, 0.0 }
 0x216   : > { %772 = vadd.xlane.f32.xlu2 %v771_v1 }
 0x218   : > { %v711_v2 = vpop.xlane.xlu0 %710 }
 0x219   : > { %1219 = vrcp.f32 %v711_v2  ;;  %v865_v3 = vpop.xlane.xlu1 %864 }
 0x21a   : > { %v866_v4 = vsub.f32 %v860_v48, %v865_v3 }
 0x21c   : > { %v867_v5 = vmul.f32 1.442695, %v866_v4 }
 0x21e   : > { %1221 = vpow2.f32 %v867_v5  ;;  %v994_v5 = vld [vmem:[%s547_s25] sm:$0xff] }
 0x21f   : > { %v1220_v6 = vpop.eup %1219 }
 0x220   : > { %v713_v7 = vmul.f32 %v1220_v6, %v1216_v47 }
 0x222   : > { %v714_v8 = vpack.c.bf16 %v713_v7, %v713_v7  ;;  %v1212_v7 = vld [vmem:[%s1480_s12] ss:$0 sm:$0xff] }
 0x224   : > { %v1222_v9 = vpop.eup %1221  ;;  %1177 = vmatmul.msk.bf16.vlgmr.msrb.gmra.mxu0 %vm683_vm1, %v714_v8 }
 0x225   : > { %v869_v10 = vsel %vm683_vm1, %v1222_v9, 0.0 }
 0x226   : > { %870 = vadd.xlane.f32.xlu1 %v869_v10 }
 0x22b   : > { %v920_v12 = vpop.permute.xlu0 %919 }
 0x22c   : > { %v925_v14 = vsel %vm683_vm1, %v920_v12, 0  ;;  %v1246_v12 = vmov 32.0  }
 0x22d   : > { %934 = vmatpush.bf16.xpose.msrb.mxu0 %v925_v14 }
 0x22e   : > { %780 = vrot.lane.b32.xlu2 %v779_v13, %s1244_s27 }
 0x23f   : > { %875 = vrot.lane.b32.xlu1 %v779_v13, %s1243_s26 }
 0x289   : > { %v773_v15 = vpop.xlane.xlu2 %772 }
 0x28a   : > { %1223 = vrcp.f32 %v773_v15 }
 0x290   : > { %v1224_v16 = vpop.eup %1223 }
 0x291   : > { %v775_v17 = vmul.f32 %v1224_v16, %v1218_v0  ;;  %v781_v18 = vpop.permute.xlu2 %780 }
 0x292   : > { %v786_v19 = vsel %vm718_vm2, %v781_v18, 0 }
 0x293   : > { %795 = vmatpush.bf16.msrb.mxu2 %v786_v19  ;;  %v776_v20 = vpack.c.bf16 %v775_v17, %v775_v17 }
 0x296   : > { %1179 = vmatmul.msk.bf16.vlgmr.msrb.gmra.mxu2 %vm683_vm1, %v776_v20 }
 0x299   : > { %v871_v23 = vpop.xlane.xlu1 %870 }
 0x29a   : > { %1225 = vrcp.f32 %v871_v23 }
 0x2a0   : > { %v1226_v25 = vpop.eup %1225 }
 0x2a1   : > { %v731_v21 = vpop.f32.mrf.mxu0  ;;  %v873_v26 = vmul.f32 %v1226_v25, %v1222_v9 }
 0x2a2   : > { %v735_v22 = vpack.c.bf16 %v731_v21, %v731_v21 }
 0x2a3   : > { %v874_v29 = vpack.c.bf16 %v873_v26, %v873_v26 }
 0x2a4   : > { %1181 = vmatmul.msk.bf16.vlgmr.msra.gmra.mxu0 %vm683_vm1, %v735_v22 }
 0x2a9   : > { %v733_v24 = vpop.f32.mrf.mxu0 }
 0x2b1   : > { %v876_v27 = vpop.permute.xlu1 %875 }
 0x2b2   : > { %v881_v28 = vsel %vm718_vm2, %v876_v27, 0 }
 0x2b3   : > { %890 = vmatpush.bf16.msra.mxu2 %v881_v28 }
 0x2b4   : > { %1185 = vmatmul.msk.bf16.vlgmr.msrb.gmra.mxu0 %vm683_vm1, %v918_v63  ;;  %v679_v63 = vld [vmem:[%s1479_s11 + $0xc] sm:$0xf] }
 0x2b5   : > { %v978_v0 = vsel %vm718_vm2, %v679_v63, 0 }
 0x2b6   : > { %1183 = vmatmul.msk.bf16.vlgmr.msra.gmra.mxu2 %vm683_vm1, %v874_v29 }
 0x2b7   : > { %987 = vmatpush.bf16.msrb.mxu2 %v978_v0 }
 0x319   : > { %v797_v35 = vpop.f32.mrf.mxu2 }
 0x31a   : > { %v801_v36 = vpack.c.bf16 %v797_v35, %v797_v35 }
 0x31c   : > { %1180 = vmatmul.msk.bf16.vlgmr.msrb.gmra.mxu3 %vm683_vm1, %v801_v36  ;;  %v1214_v36 = vld [vmem:[%s1482_s14] ss:$0 sm:$0xff] }
 0x321   : > { %v799_v37 = vpop.f32.mrf.mxu2  ;;  %v836_v38 = vpop.f32.mrf.mxu0 }
 0x329   : > { %v838_v39 = vpop.f32.mrf.mxu0 }
 0x331   : > { %v936_v40 = vpop.f32.mrf.mxu0 }
 0x332   : > { %v937_v41 = vadd.f32 %v1393_v33, %v936_v40 }
 0x334   : > { %v940_v42 = vsel %vm683_vm1, %v937_v41, -inf }
 0x335   : > { %941 = vmax.xlane.f32.xlu0 %v940_v42 }
 0x339   : > { %v892_v43 = vpop.f32.mrf.mxu2  ;;  %v938_v44 = vpop.f32.mrf.mxu0 }
 0x33a   : > { %v896_v45 = vpack.c.bf16 %v892_v43, %v892_v43 }
 0x33c   : > { %1184 = vmatmul.msk.bf16.vlgmr.msra.gmra.mxu3 %vm683_vm1, %v896_v45 }
 0x341   : > { %v894_v46 = vpop.f32.mrf.mxu2 }
 0x39f   : > { %v817_v47 = vpop.f32.mrf.mxu3 }
 0x3a0   : > { %v837_v33 = vadd.f32 %v836_v38, %v817_v47 }
 0x3a7   : > { %v819_v48 = vpop.f32.mrf.mxu3 }
 0x3a8   : > { %v942_v49 = vpop.xlane.xlu0 %941 }
 0x3a9   : > { %v943_v50 = vsub.f32 %v937_v41, %v942_v49 }
 0x3ab   : > { %v944_v51 = vmul.f32 1.442695, %v943_v50 }
 0x3ad   : > { %1227 = vpow2.f32 %v944_v51 }
 0x3b3   : > { %v1228_v52 = vpop.eup %1227 }
 0x3b4   : > { %v946_v53 = vsel %vm683_vm1, %v1228_v52, 0.0 }
 0x3b5   : > { %947 = vadd.xlane.f32.xlu0 %v946_v53 }
 0x3bf   : > { %v912_v54 = vpop.f32.mrf.mxu3 }
 0x3c0   : > { %v916_v55 = vadd.f32 %v912_v54, %v837_v33 }
 0x3c7   : > { %v914_v56 = vpop.f32.mrf.mxu3 }
 0x3c9   : > { %952 = vrot.lane.b32.xlu0 %v779_v13, %s1245_s17 }
 0x428   : > { %v948_v57 = vpop.xlane.xlu0 %947 }
 0x429   : > { %1229 = vrcp.f32 %v948_v57 }
 0x42a   : > { %1231 = vrcp.f32 %v1246_v12 }
 0x42f   : > { %v1230_v58 = vpop.eup %1229 }
 0x430   : > { %v950_v59 = vmul.f32 %v1230_v58, %v1228_v52  ;;  %v1232_v13 = vpop.eup %1231 }
 0x431   : > { %v1005_v14 = vmul.f32 32.0, %v1232_v13  ;;  %vm1009_vm3 = vweird.f32 %v1232_v13 }
 0x432   : > { %v951_v62 = vpack.c.bf16 %v950_v59, %v950_v59 }
 0x433   : > { %v1006_v15 = vsub.f32 1.0, %v1005_v14 }
 0x435   : > { %v1007_v16 = vmul.f32 %v1232_v13, %v1006_v15 }
 0x437   : > { %v1008_v17 = vadd.f32 %v1232_v13, %v1007_v16 }
 0x439   : > { %v1010_v18 = vsel %vm1009_vm3, %v1232_v13, %v1008_v17 }
 0x43b   : > { %v953_v60 = vpop.permute.xlu0 %952 }
 0x43c   : > { %v958_v61 = vsel %vm718_vm2, %v953_v60, 0 }
 0x43d   : > { %967 = vmatpush.bf16.msrb.mxu1 %v958_v61 }
 0x440   : > { %1186 = vmatmul.msk.bf16.vlgmr.msrb.gmra.mxu1 %vm683_vm1, %v951_v62 }
 0x4bd   : > { %v969_v1 = vpop.f32.mrf.mxu1 }
 0x4be   : > { %v973_v2 = vpack.c.bf16 %v969_v1, %v969_v1 }
 0x4c0   : > { %1187 = vmatmul.msk.bf16.vlgmr.msrb.gmra.mxu2 %vm683_vm1, %v973_v2 }
 0x4c5   : > { %v971_v3 = vpop.f32.mrf.mxu1 }
 0x543   : > { %v989_v4 = vpop.f32.mrf.mxu2 }
 0x544   : > { %v993_v6 = vadd.f32 %v989_v4, %v916_v55 }
 0x546   : > { %v995_v8 = vadd.f32 %v994_v5, %v993_v6 }
 0x548   : > { %v1000_v9 = vadd.f32 %v1212_v7, %v995_v8 }
 0x54a   : > { %v1001_v10 = vsel %vm582_vm0, %v1000_v9, 0.0 }
 0x54b   : > { %1002 = vadd.xlane.f32.xlu2 %v1001_v10  ;;  %v991_v11 = vpop.f32.mrf.mxu2 }
 0x5be   : > { %v1003_v19 = vpop.xlane.xlu2 %1002 }
 0x5bf   : > { %v1011_v20 = vmul.f32 %v1010_v18, %v1003_v19 }
 0x5c1   : > { %v1012_v21 = vsub.f32 %v1000_v9, %v1011_v20 }
 0x5c3   : > { %v1013_v22 = vmul.f32 %v1012_v21, %v1012_v21 }
 0x5c5   : > { %v1014_v23 = vsel %vm582_vm0, %v1013_v22, 0.0 }
 0x5c6   : > { %1015 = vadd.xlane.f32.xlu1 %v1014_v23 }
 0x639   : > { %v1016_v24 = vpop.xlane.xlu1 %1015 }
 0x63a   : > { %v1017_v25 = vmul.f32 %v1016_v24, %v1010_v18 }
 0x63c   : > { %v1018_v26 = vadd.f32 1e-05, %v1017_v25 }
 0x63e   : > { %1233 = vrsqrt.f32 %v1018_v26  ;;  %vm1025_vm5 = vweird.f32 %v1018_v26 }
 0x644   : > { %v1234_v27 = vpop.eup %1233 }
 0x645   : > { %v1020_v28 = vmul.f32 %v1234_v27, %v1018_v26  ;;  %vm1026_vm4 = vweird.f32 %v1234_v27 }
 0x646   : > { %vm1027_vm6 = vmor %vm1025_vm5, %vm1026_vm4 }
 0x647   : > { %v1021_v29 = vmul.f32 %v1234_v27, %v1020_v28 }
 0x649   : > { %v1022_v30 = vmul.f32 0.5, %v1021_v29 }
 0x64b   : > { %v1023_v31 = vsub.f32 1.5, %v1022_v30 }
 0x64d   : > { %v1024_v32 = vmul.f32 %v1234_v27, %v1023_v31 }
 0x64f   : > { %v1028_v35 = vsel %vm1027_vm6, %v1234_v27, %v1024_v32 }
 0x650   : > { %v1029_v37 = vmul.f32 %v1028_v35, %v1012_v21 }
 0x652   : > { %v1034_v38 = vmul.f32 %v1213_v34, %v1029_v37 }
 0x654   : > { %v1039_v39 = vadd.f32 %v1214_v36, %v1034_v38 }
 0x656   : > { %1040 = vst.msk [vmem:[%s554_s23] sm:$0xff] %vm582_vm0, %v1039_v39 }
 0x657 PF: > { %s25_s18 = sadd.s32 1, %s1241_s18  }
 0x658   : > { %p22_p4 = scmp.ge.s32.totalorder %s25_s18, 4  }
 0x65a   :  { %24 = sbr.rel (!%p22_p4) target bundleno = 1 (0x1), region = 122 }

</bundles_post_ra>
